<compile_context>
chip_gen: v6e
topology: v6e:2x2x1
jax: 0.10.0
libtpu: 0.0.40
codegen_flags: <defaults>
</compile_context>

<pallas_src>
import jax
import jax.numpy as jnp
from jax.experimental import pallas as pl
from jax.experimental.pallas import tpu as pltpu


def _transpose_kernel(x_ref, o_ref):
    # x_ref: (Hc, S, D) tile, o_ref: (Hc, D, S) tile.
    Hc, S, D = x_ref.shape
    n_pairs = Hc // 2
    # Paired-head lane-dense transposes: (S, 2*D) -> (2*D, S), then split the
    # sublane halves back into the two heads.  Small static loop (3 pairs at
    # the spec shape) -> fully unrolled, low vreg pressure per pair.
    for p in range(n_pairs):
        h0 = 2 * p
        h1 = 2 * p + 1
        pair = jnp.concatenate([x_ref[h0], x_ref[h1]], axis=-1)  # (S, 2*D)
        t = pair.T  # (2*D, S); 2D transpose only (3D .T would reverse all axes)
        o_ref[h0] = t[:D, :]
        o_ref[h1] = t[D:, :]
    # Odd tail (only hit if the per-step head count is odd).
    if Hc % 2 == 1:
        o_ref[Hc - 1] = x_ref[Hc - 1].T


def transpose_last_two(x, h_chunks=None):
    B, H, S, D = x.shape
    if h_chunks is None:
        # 2-wide parallel split: on v7x each TensorCore takes half the heads;
        # on v5e/v6e it gives DMA/compute overlap at one extra ~0.35us step.
        # TODO(synk): sweep h_chunks in {2,3(,4)} per chip generation; expected
        # gain is a few percent at most at this shape.
        h_chunks = 2 if (H % 2 == 0 and H >= 2) else 1
    hc = H // h_chunks

    itemsize = jnp.dtype(x.dtype).itemsize
    out_shape = jax.ShapeDtypeStruct((B, H, D, S), x.dtype)
    return pl.pallas_call(
        _transpose_kernel,
        out_shape=out_shape,
        grid=(B, h_chunks),
        in_specs=[
            pl.BlockSpec(
                (pl.Squeezed(), hc, S, D),
                lambda b, h: (b, h, 0, 0),
            )
        ],
        out_specs=pl.BlockSpec(
            (pl.Squeezed(), hc, D, S),
            lambda b, h: (b, h, 0, 0),
        ),
        compiler_params=pltpu.CompilerParams(
            dimension_semantics=("parallel", "parallel")
        ),
        cost_estimate=pl.CostEstimate(
            flops=0,
            transcendentals=0,
            bytes_accessed=2 * B * H * S * D * itemsize,
        ),
    )(x)


if __name__ == "__main__":
    key = jax.random.PRNGKey(0)
    # Shape implied by the module's forward: [1, 12, 384, 64] (~1.2 MB, small).
    x301 = jax.random.normal(key, (1, 12, 384, 64), dtype=jnp.float32)

    out = jax.block_until_ready(transpose_last_two(x301))

    ref = jnp.swapaxes(x301, -1, -2)
    assert out.shape == (1, 12, 64, 384), out.shape
    assert jnp.array_equal(out, ref), "mismatch vs reference transpose"

    print("KERNEL_OK")
</pallas_src>

<mosaic_0001>
module attributes {stable_mosaic.version = 11 : i64} {
  func.func @_transpose_kernel(%arg0: i32, %arg1: i32, %arg2: memref<1x6x384x64xf32, #tpu.memory_space<vmem>>, %arg3: memref<1x6x64x384xf32, #tpu.memory_space<vmem>>) attributes {dimension_semantics = [#tpu.dimension_semantics<parallel>, #tpu.dimension_semantics<parallel>], iteration_bounds = array<i64: 1, 2>, scalar_prefetch = 0 : i64, scratch_operands = 0 : i64, tpu.core_type = #tpu.core_type<tc>, window_params = [{transform_indices = @transform_0, window_bounds = array<i64: 1, 6, 384, 64>}, {transform_indices = @transform_1, window_bounds = array<i64: 1, 6, 64, 384>}]} {
    %c0 = arith.constant 0 : index
    %c0_0 = arith.constant 0 : index
    %c0_1 = arith.constant 0 : index
    %c0_2 = arith.constant 0 : index
    %0 = vector.load %arg2[%c0, %c0_0, %c0_1, %c0_2] : memref<1x6x384x64xf32, #tpu.memory_space<vmem>>, vector<1x1x384x64xf32>
    %1 = vector.shape_cast %0 : vector<1x1x384x64xf32> to vector<384x64xf32>
    %c0_3 = arith.constant 0 : index
    %c1 = arith.constant 1 : index
    %c0_4 = arith.constant 0 : index
    %c0_5 = arith.constant 0 : index
    %2 = vector.load %arg2[%c0_3, %c1, %c0_4, %c0_5] : memref<1x6x384x64xf32, #tpu.memory_space<vmem>>, vector<1x1x384x64xf32>
    %3 = vector.shape_cast %2 : vector<1x1x384x64xf32> to vector<384x64xf32>
    %4 = tpu.concatenate %1, %3 in 1 : vector<384x64xf32>, vector<384x64xf32> -> vector<384x128xf32>
    %5 = tpu.transpose %4, [1, 0] : vector<384x128xf32> -> vector<128x384xf32>
    %6 = vector.extract_strided_slice %5 {offsets = [0, 0], sizes = [64, 384], strides = [1, 1]} : vector<128x384xf32> to vector<64x384xf32>
    %c0_6 = arith.constant 0 : index
    %c0_7 = arith.constant 0 : index
    %c0_8 = arith.constant 0 : index
    %c0_9 = arith.constant 0 : index
    %7 = vector.load %arg3[%c0_6, %c0_7, %c0_8, %c0_9] : memref<1x6x64x384xf32, #tpu.memory_space<vmem>>, vector<1x1x64x384xf32>
    %8 = vector.shape_cast %7 : vector<1x1x64x384xf32> to vector<64x384xf32>
    %9 = vector.shape_cast %6 : vector<64x384xf32> to vector<1x1x64x384xf32>
    tpu.vector_store %arg3[%c0_6, %c0_7, %c0_8, %c0_9], %9 {strides = array<i32>} : memref<1x6x64x384xf32, #tpu.memory_space<vmem>>, vector<1x1x64x384xf32>,
    %10 = vector.extract_strided_slice %5 {offsets = [64, 0], sizes = [64, 384], strides = [1, 1]} : vector<128x384xf32> to vector<64x384xf32>
    %c0_10 = arith.constant 0 : index
    %c1_11 = arith.constant 1 : index
    %c0_12 = arith.constant 0 : index
    %c0_13 = arith.constant 0 : index
    %11 = vector.load %arg3[%c0_10, %c1_11, %c0_12, %c0_13] : memref<1x6x64x384xf32, #tpu.memory_space<vmem>>, vector<1x1x64x384xf32>
    %12 = vector.shape_cast %11 : vector<1x1x64x384xf32> to vector<64x384xf32>
    %13 = vector.shape_cast %10 : vector<64x384xf32> to vector<1x1x64x384xf32>
    tpu.vector_store %arg3[%c0_10, %c1_11, %c0_12, %c0_13], %13 {strides = array<i32>} : memref<1x6x64x384xf32, #tpu.memory_space<vmem>>, vector<1x1x64x384xf32>,
    %c0_14 = arith.constant 0 : index
    %c2 = arith.constant 2 : index
    %c0_15 = arith.constant 0 : index
    %c0_16 = arith.constant 0 : index
    %14 = vector.load %arg2[%c0_14, %c2, %c0_15, %c0_16] : memref<1x6x384x64xf32, #tpu.memory_space<vmem>>, vector<1x1x384x64xf32>
    %15 = vector.shape_cast %14 : vector<1x1x384x64xf32> to vector<384x64xf32>
    %c0_17 = arith.constant 0 : index
    %c3 = arith.constant 3 : index
    %c0_18 = arith.constant 0 : index
    %c0_19 = arith.constant 0 : index
    %16 = vector.load %arg2[%c0_17, %c3, %c0_18, %c0_19] : memref<1x6x384x64xf32, #tpu.memory_space<vmem>>, vector<1x1x384x64xf32>
    %17 = vector.shape_cast %16 : vector<1x1x384x64xf32> to vector<384x64xf32>
    %18 = tpu.concatenate %15, %17 in 1 : vector<384x64xf32>, vector<384x64xf32> -> vector<384x128xf32>
    %19 = tpu.transpose %18, [1, 0] : vector<384x128xf32> -> vector<128x384xf32>
    %20 = vector.extract_strided_slice %19 {offsets = [0, 0], sizes = [64, 384], strides = [1, 1]} : vector<128x384xf32> to vector<64x384xf32>
    %c0_20 = arith.constant 0 : index
    %c2_21 = arith.constant 2 : index
    %c0_22 = arith.constant 0 : index
    %c0_23 = arith.constant 0 : index
    %21 = vector.load %arg3[%c0_20, %c2_21, %c0_22, %c0_23] : memref<1x6x64x384xf32, #tpu.memory_space<vmem>>, vector<1x1x64x384xf32>
    %22 = vector.shape_cast %21 : vector<1x1x64x384xf32> to vector<64x384xf32>
    %23 = vector.shape_cast %20 : vector<64x384xf32> to vector<1x1x64x384xf32>
    tpu.vector_store %arg3[%c0_20, %c2_21, %c0_22, %c0_23], %23 {strides = array<i32>} : memref<1x6x64x384xf32, #tpu.memory_space<vmem>>, vector<1x1x64x384xf32>,
    %24 = vector.extract_strided_slice %19 {offsets = [64, 0], sizes = [64, 384], strides = [1, 1]} : vector<128x384xf32> to vector<64x384xf32>
    %c0_24 = arith.constant 0 : index
    %c3_25 = arith.constant 3 : index
    %c0_26 = arith.constant 0 : index
    %c0_27 = arith.constant 0 : index
    %25 = vector.load %arg3[%c0_24, %c3_25, %c0_26, %c0_27] : memref<1x6x64x384xf32, #tpu.memory_space<vmem>>, vector<1x1x64x384xf32>
    %26 = vector.shape_cast %25 : vector<1x1x64x384xf32> to vector<64x384xf32>
    %27 = vector.shape_cast %24 : vector<64x384xf32> to vector<1x1x64x384xf32>
    tpu.vector_store %arg3[%c0_24, %c3_25, %c0_26, %c0_27], %27 {strides = array<i32>} : memref<1x6x64x384xf32, #tpu.memory_space<vmem>>, vector<1x1x64x384xf32>,
    %c0_28 = arith.constant 0 : index
    %c4 = arith.constant 4 : index
    %c0_29 = arith.constant 0 : index
    %c0_30 = arith.constant 0 : index
    %28 = vector.load %arg2[%c0_28, %c4, %c0_29, %c0_30] : memref<1x6x384x64xf32, #tpu.memory_space<vmem>>, vector<1x1x384x64xf32>
    %29 = vector.shape_cast %28 : vector<1x1x384x64xf32> to vector<384x64xf32>
    %c0_31 = arith.constant 0 : index
    %c5 = arith.constant 5 : index
    %c0_32 = arith.constant 0 : index
    %c0_33 = arith.constant 0 : index
    %30 = vector.load %arg2[%c0_31, %c5, %c0_32, %c0_33] : memref<1x6x384x64xf32, #tpu.memory_space<vmem>>, vector<1x1x384x64xf32>
    %31 = vector.shape_cast %30 : vector<1x1x384x64xf32> to vector<384x64xf32>
    %32 = tpu.concatenate %29, %31 in 1 : vector<384x64xf32>, vector<384x64xf32> -> vector<384x128xf32>
    %33 = tpu.transpose %32, [1, 0] : vector<384x128xf32> -> vector<128x384xf32>
    %34 = vector.extract_strided_slice %33 {offsets = [0, 0], sizes = [64, 384], strides = [1, 1]} : vector<128x384xf32> to vector<64x384xf32>
    %c0_34 = arith.constant 0 : index
    %c4_35 = arith.constant 4 : index
    %c0_36 = arith.constant 0 : index
    %c0_37 = arith.constant 0 : index
    %35 = vector.load %arg3[%c0_34, %c4_35, %c0_36, %c0_37] : memref<1x6x64x384xf32, #tpu.memory_space<vmem>>, vector<1x1x64x384xf32>
    %36 = vector.shape_cast %35 : vector<1x1x64x384xf32> to vector<64x384xf32>
    %37 = vector.shape_cast %34 : vector<64x384xf32> to vector<1x1x64x384xf32>
    tpu.vector_store %arg3[%c0_34, %c4_35, %c0_36, %c0_37], %37 {strides = array<i32>} : memref<1x6x64x384xf32, #tpu.memory_space<vmem>>, vector<1x1x64x384xf32>,
    %38 = vector.extract_strided_slice %33 {offsets = [64, 0], sizes = [64, 384], strides = [1, 1]} : vector<128x384xf32> to vector<64x384xf32>
    %c0_38 = arith.constant 0 : index
    %c5_39 = arith.constant 5 : index
    %c0_40 = arith.constant 0 : index
    %c0_41 = arith.constant 0 : index
    %39 = vector.load %arg3[%c0_38, %c5_39, %c0_40, %c0_41] : memref<1x6x64x384xf32, #tpu.memory_space<vmem>>, vector<1x1x64x384xf32>
    %40 = vector.shape_cast %39 : vector<1x1x64x384xf32> to vector<64x384xf32>
    %41 = vector.shape_cast %38 : vector<64x384xf32> to vector<1x1x64x384xf32>
    tpu.vector_store %arg3[%c0_38, %c5_39, %c0_40, %c0_41], %41 {strides = array<i32>} : memref<1x6x64x384xf32, #tpu.memory_space<vmem>>, vector<1x1x64x384xf32>,
    return
  }
  func.func @transform_0(%arg0: i32, %arg1: i32) -> (i32, i32, i32, i32) {
    %c0_i32 = arith.constant 0 : i32
    %c0_i32_0 = arith.constant 0 : i32
    %c0_i32_1 = arith.constant 0 : i32
    return %arg0, %arg1, %c0_i32, %c0_i32_0 : i32, i32, i32, i32
  }
  func.func @transform_1(%arg0: i32, %arg1: i32) -> (i32, i32, i32, i32) {
    %c0_i32 = arith.constant 0 : i32
    %c0_i32_0 = arith.constant 0 : i32
    %c0_i32_1 = arith.constant 0 : i32
    return %arg0, %arg1, %c0_i32, %c0_i32_0 : i32, i32, i32, i32
  }
}

</mosaic_0001>

<bundles_post_ra>
// kernel: tpu_custom_call.1
= control target key start
LH: loop header
LB: loop body
LE: loop exit
PB: predicated region body
PF: predicated region fallthrough
CT: control target
= control target key end

     0   :  { %6 = vsyncpa [#allocation3], 0  ;;  %s3496_s0 = inlined_call_operand.vmem [shape: f32[1,12,384,64], index: 0, kind: input, shape index: {}]   ;;  %s3497_s1 = inlined_call_operand.hbm [shape: f32[1,12,64,384], index: 1, kind: output, shape index: {}]  }
   0x1   :  { %8 = vsyncpa [#allocation3 + $0x1], 0  ;;  %s2222_s6 = smov 0   ;;  %s2224_s7 = smov 0  }
   0x2   :  { %s2226_s8 = smov 0   ;;  %s2228_s9 = smov 0  }
   0x3   :  { %s2230_s10 = smov 0   ;;  %s2232_s11 = smov 0  }
   0x4 LB: > { %s1699_s12 = sadd.s32 4294967295, %s2206_s11   ;;  %s1700_s13 = sadd.s32 4294967294, %s2206_s11   ;;  %s2206_s11 = sphi %s2232_s11, %s14_s11   ;;  %s2202_s10 = sphi %s2230_s10, %s3572_s10   ;;  %s2198_s9 = sphi %s2228_s9, %s3571_s9   ;;  %s2194_s8 = sphi %s2226_s8, %s3570_s8   ;;  %s2190_s7 = sphi %s2224_s7, %s3569_s7   ;;  %s2186_s6 = sphi %s2222_s6, %s3568_s6  }
   0x5   : > { %s23_s14 = sadd.s32 1, %s2202_s10  ;;  %s63_s15 = sadd.s32 1, %s2194_s8 }
   0x6   : > { %p24_p0 = scmp.ge.s32.totalorder %s23_s14, 2  ;;  %p73_p1 = scmp.ne.s32.totalorder %s2194_s8, %s2190_s7 }
   0x7   : > { %p74_p2 = scmp.eq.s32.totalorder %s1699_s12, 1  ;;  %p79_p3 = scmp.ne.s32.totalorder %s2190_s7, %s2186_s6 }
   0x8   : > { %s3574_s14 = smov (%p24_p0, %s23_s14), 0  ;;  %p80_p5 = scmp.eq.s32.totalorder %s1700_s13, 1 }
   0x9   : > { %p2262_p4 = por %p74_p2, %p73_p1  ;;  %s59_s17 = ssub.s32 %s2202_s10, %s3574_s14 }
   0xa   : > { %p1703_p6 = scmp.ge.s32.totalorder %s2206_s11, 1  ;;  %p61_p7 = scmp.eq.s32.totalorder %s59_s17, 0 }
   0xb   : > { %p2269_p8 = por %p80_p5, %p79_p3  ;;  %p112_p9 = scmp.lt.s32.totalorder %s2206_s11, 3 }
   0xc   : > { %s2275_s19 = scalar_select %p61_p7, %s2194_s8, %s63_s15  }
   0xd   : > { %p113_p10 = pnand %p1703_p6, %p112_p9 }
   0xf   : > { %116 = sbr.rel (%p113_p10) target bundleno = 798 (0x31e), region = 24 }
  0x14   : > { %s137_s20 = smul.u32 6, %s2198_s9  ;;  %s2208_s25 = smov 64   ;;  %vm438_vm0 = vcmask 523264  }
  0x15   : > { %s134_s26 = sand.u32 1, %s2190_s7   ;;  %s2077_s29 = smul.u32 18432, %s2198_s9 }
  0x16   : > { %p140_p11 = scmp.lt.s32.totalorder %s137_s20, 11  ;;  %s2068_s27 = smul.u32 1152, %s134_s26 }
  0x17   : > { %s3444_s4 = scalar_lea.hbm %s3497_s1, %s2077_s29  ;;  %s3451_s5 = scalar_lea.sflag [#allocation3], %s134_s26 }
  0x18   : > { %s3576_s20 = smov (!%p140_p11, %s137_s20), 11  ;;  %s2913_s28 = scalar_lea.vmem [#allocation2], %s2068_s27 }
  0x19   : > { %s2069_s21 = smul.u32 384, %s3576_s20  ;;  %s1617_s30 = sshll.u32 %s2913_s28, 4  ;;  %s3446_s30 = int_to_ptr.vmem [resolvable:$true] %s1617_s30 }
  0x1a   : > { %s2130_s12 = scalar_lea.vmem %s3446_s30, 18432  ;;  %s2209_s9 = smov [#allocation2]  }
  0x1b   : > { %s2281_s24 = scalar_lea.vmem %s3496_s0, %s2069_s21  ;;  %p2131_p12 = scmp.ne.s32.totalorder %s3446_s30, %s2130_s12 }
  0x1c   : > { %v1707_v0 = vld [vmem:[%s2281_s24 + $0x190] sm:$0xff]  ;;  %v1705_v1 = vld [vmem:[%s2281_s24 + $0x180] sm:$0xff]  ;;  %v1708_v2 = vld [vmem:[%s2281_s24 + $0x198] sm:$0xff]  ;;  %s2134_s13 = sshll.u32 %s2209_s9, 4  ;;  %s2135_s13 = int_to_ptr.vmem [resolvable:$false] %s2134_s13 }
  0x1d   : > { %298 = vrot.lane.b32.xlu1 %v1707_v0, %s2208_s25  ;;  %294 = vrot.lane.b32.xlu0 %v1705_v1, %s2208_s25  ;;  %v1706_v3 = vld [vmem:[%s2281_s24 + $0x188] sm:$0xff]  ;;  %v1709_v5 = vld [vmem:[%s2281_s24 + $0x1a0] sm:$0xff]  ;;  %p2132_p13 = pnand %p2131_p12, %p2262_p4  ;;  %s2136_s15 = scalar_lea.vmem %s2135_s13, 36864 }
  0x1e   : > { %v1710_v4 = vld [vmem:[%s2281_s24 + $0x1a8] sm:$0xff]  ;;  %v1712_v6 = vld [vmem:[%s2281_s24 + $0x1b8] sm:$0xff]  ;;  %v1711_v7 = vld [vmem:[%s2281_s24 + $0x1b0] sm:$0xff]  ;;  %p2137_p1 = scmp.lt.s32.totalorder %s3446_s30, %s2135_s13  ;;  %p2138_p2 = scmp.lt.s32.totalorder %s2136_s15, %s2130_s12 }
  0x1f   : > { %v1714_v8 = vld [vmem:[%s2281_s24 + $0x1c8] sm:$0xff]  ;;  %v1713_v9 = vld [vmem:[%s2281_s24 + $0x1c0] sm:$0xff]  ;;  %v1716_v10 = vld [vmem:[%s2281_s24 + $0x1d8] sm:$0xff]  ;;  %p2133_p0 = pneg %p2132_p13 }
  0x20   : > { %v1715_v11 = vld [vmem:[%s2281_s24 + $0x1d0] sm:$0xff]  ;;  %v1718_v12 = vld [vmem:[%s2281_s24 + $0x1e8] sm:$0xff]  ;;  %v1717_v13 = vld [vmem:[%s2281_s24 + $0x1e0] sm:$0xff]  ;;  %p2139_p3 = por %p2138_p2, %p2137_p1 }
  0x21   : > { %300 = vrot.lane.b32.xlu1 %v1708_v2, %s2208_s25  ;;  %296 = vrot.lane.b32.xlu0 %v1706_v3, %s2208_s25  ;;  %v1720_v14 = vld [vmem:[%s2281_s24 + $0x1f8] sm:$0xff]  ;;  %v1719_v15 = vld [vmem:[%s2281_s24 + $0x1f0] sm:$0xff] }
  0x22   : > { %v1722_v16 = vld [vmem:[%s2281_s24 + $0x208] sm:$0xff]  ;;  %v1721_v17 = vld [vmem:[%s2281_s24 + $0x200] sm:$0xff]  ;;  %v1724_v18 = vld [vmem:[%s2281_s24 + $0x218] sm:$0xff]  ;;  %p2140_p5 = pnand %p2139_p3, %p2133_p0 }
  0x23   : > { %v1723_v19 = vld [vmem:[%s2281_s24 + $0x210] sm:$0xff]  ;;  %v1726_v20 = vld [vmem:[%s2281_s24 + $0x228] sm:$0xff]  ;;  %v1725_v21 = vld [vmem:[%s2281_s24 + $0x220] sm:$0xff] }
  0x24   : > { %v1728_v22 = vld [vmem:[%s2281_s24 + $0x238] sm:$0xff]  ;;  %v1727_v23 = vld [vmem:[%s2281_s24 + $0x230] sm:$0xff]  ;;  %v1730_v24 = vld [vmem:[%s2281_s24 + $0x248] sm:$0xff] }
  0x25   : > { %304 = vrot.lane.b32.xlu1 %v1710_v4, %s2208_s25  ;;  %302 = vrot.lane.b32.xlu0 %v1709_v5, %s2208_s25  ;;  %v1729_v25 = vld [vmem:[%s2281_s24 + $0x240] sm:$0xff]  ;;  %v1732_v26 = vld [vmem:[%s2281_s24 + $0x258] sm:$0xff] }
  0x26   : > { %v1731_v27 = vld [vmem:[%s2281_s24 + $0x250] sm:$0xff]  ;;  %v1734_v28 = vld [vmem:[%s2281_s24 + $0x268] sm:$0xff]  ;;  %v1733_v29 = vld [vmem:[%s2281_s24 + $0x260] sm:$0xff] }
  0x27   : > { %v1736_v30 = vld [vmem:[%s2281_s24 + $0x278] sm:$0xff]  ;;  %v1735_v31 = vld [vmem:[%s2281_s24 + $0x270] sm:$0xff]  ;;  %v1738_v32 = vld [vmem:[%s2281_s24 + $0x288] sm:$0xff] }
  0x28   : > { %v1737_v33 = vld [vmem:[%s2281_s24 + $0x280] sm:$0xff]  ;;  %v1740_v34 = vld [vmem:[%s2281_s24 + $0x298] sm:$0xff]  ;;  %v1739_v35 = vld [vmem:[%s2281_s24 + $0x290] sm:$0xff] }
  0x29   : > { %308 = vrot.lane.b32.xlu1 %v1712_v6, %s2208_s25  ;;  %306 = vrot.lane.b32.xlu0 %v1711_v7, %s2208_s25  ;;  %v1742_v36 = vld [vmem:[%s2281_s24 + $0x2a8] sm:$0xff]  ;;  %v1741_v37 = vld [vmem:[%s2281_s24 + $0x2a0] sm:$0xff] }
  0x2a   : > { %v1744_v38 = vld [vmem:[%s2281_s24 + $0x2b8] sm:$0xff]  ;;  %v1743_v39 = vld [vmem:[%s2281_s24 + $0x2b0] sm:$0xff]  ;;  %v1746_v40 = vld [vmem:[%s2281_s24 + $0x2c8] sm:$0xff] }
  0x2b   : > { %v1745_v41 = vld [vmem:[%s2281_s24 + $0x2c0] sm:$0xff]  ;;  %v1748_v42 = vld [vmem:[%s2281_s24 + $0x2d8] sm:$0xff]  ;;  %v1747_v43 = vld [vmem:[%s2281_s24 + $0x2d0] sm:$0xff] }
  0x2c   : > { %v1750_v44 = vld [vmem:[%s2281_s24 + $0x2e8] sm:$0xff]  ;;  %v1749_v45 = vld [vmem:[%s2281_s24 + $0x2e0] sm:$0xff]  ;;  %v1752_v46 = vld [vmem:[%s2281_s24 + $0x2f8] sm:$0xff] }
  0x2d   : > { %312 = vrot.lane.b32.xlu1 %v1714_v8, %s2208_s25  ;;  %310 = vrot.lane.b32.xlu0 %v1713_v9, %s2208_s25  ;;  %v1751_v47 = vld [vmem:[%s2281_s24 + $0x2f0] sm:$0xff]  ;;  %v1825_v48 = vld [vmem:[%s2281_s24 + $0x480] sm:$0xff] }
  0x2e   : > { %v1832_v49 = vld [vmem:[%s2281_s24 + $0x4b8] sm:$0xff]  ;;  %v1826_v50 = vld [vmem:[%s2281_s24 + $0x488] sm:$0xff]  ;;  %v1843_v51 = vld [vmem:[%s2281_s24 + $0x510] sm:$0xff] }
  0x2f   : > { %v1827_v52 = vld [vmem:[%s2281_s24 + $0x490] sm:$0xff]  ;;  %v1845_v53 = vld [vmem:[%s2281_s24 + $0x520] sm:$0xff]  ;;  %v1828_v54 = vld [vmem:[%s2281_s24 + $0x498] sm:$0xff] }
  0x30   : > { %v1847_v55 = vld [vmem:[%s2281_s24 + $0x530] sm:$0xff]  ;;  %v1829_v56 = vld [vmem:[%s2281_s24 + $0x4a0] sm:$0xff]  ;;  %v1830_v58 = vld [vmem:[%s2281_s24 + $0x4a8] sm:$0xff] }
  0x31   : > { %316 = vrot.lane.b32.xlu1 %v1716_v10, %s2208_s25  ;;  %314 = vrot.lane.b32.xlu0 %v1715_v11, %s2208_s25  ;;  %v1849_v57 = vld [vmem:[%s2281_s24 + $0x540] sm:$0xff]  ;;  %v1851_v59 = vld [vmem:[%s2281_s24 + $0x550] sm:$0xff] }
  0x32   : > { %v1831_v62 = vld [vmem:[%s2281_s24 + $0x4b0] sm:$0xff]  ;;  %v1853_v63 = vld [vmem:[%s2281_s24 + $0x560] sm:$0xff]  ;;  %v1834_v6 = vld [vmem:[%s2281_s24 + $0x4c8] sm:$0xff] }
  0x33   : > { %v1833_v2 = vld [vmem:[%s2281_s24 + $0x4c0] sm:$0xff]  ;;  %v1855_v3 = vld [vmem:[%s2281_s24 + $0x570] sm:$0xff] }
  0x34   : > { %v1857_v7 = vld [vmem:[%s2281_s24 + $0x580] sm:$0xff]  ;;  %v1835_v10 = vld [vmem:[%s2281_s24 + $0x4d0] sm:$0xff] }
  0x35   : > { %320 = vrot.lane.b32.xlu1 %v1718_v12, %s2208_s25  ;;  %318 = vrot.lane.b32.xlu0 %v1717_v13, %s2208_s25  ;;  %v1859_v11 = vld [vmem:[%s2281_s24 + $0x590] sm:$0xff] }
  0x39   : > { %324 = vrot.lane.b32.xlu1 %v1720_v14, %s2208_s25  ;;  %322 = vrot.lane.b32.xlu0 %v1719_v15, %s2208_s25  ;;  %v1836_v14 = vld [vmem:[%s2281_s24 + $0x4d8] sm:$0xff]  ;;  %v1861_v15 = vld [vmem:[%s2281_s24 + $0x5a0] sm:$0xff] }
  0x3d   : > { %328 = vrot.lane.b32.xlu1 %v1722_v16, %s2208_s25  ;;  %326 = vrot.lane.b32.xlu0 %v1721_v17, %s2208_s25 }
  0x41   : > { %332 = vrot.lane.b32.xlu1 %v1724_v18, %s2208_s25  ;;  %330 = vrot.lane.b32.xlu0 %v1723_v19, %s2208_s25  ;;  %v1837_v18 = vld [vmem:[%s2281_s24 + $0x4e0] sm:$0xff]  ;;  %v1863_v19 = vld [vmem:[%s2281_s24 + $0x5b0] sm:$0xff] }
  0x45   : > { %336 = vrot.lane.b32.xlu1 %v1726_v20, %s2208_s25  ;;  %334 = vrot.lane.b32.xlu0 %v1725_v21, %s2208_s25 }
  0x49   : > { %340 = vrot.lane.b32.xlu1 %v1728_v22, %s2208_s25  ;;  %338 = vrot.lane.b32.xlu0 %v1727_v23, %s2208_s25  ;;  %v1838_v22 = vld [vmem:[%s2281_s24 + $0x4e8] sm:$0xff]  ;;  %v1865_v23 = vld [vmem:[%s2281_s24 + $0x5c0] sm:$0xff] }
  0x4d   : > { %344 = vrot.lane.b32.xlu1 %v1730_v24, %s2208_s25  ;;  %342 = vrot.lane.b32.xlu0 %v1729_v25, %s2208_s25 }
  0x51   : > { %348 = vrot.lane.b32.xlu1 %v1732_v26, %s2208_s25  ;;  %346 = vrot.lane.b32.xlu0 %v1731_v27, %s2208_s25  ;;  %v1839_v26 = vld [vmem:[%s2281_s24 + $0x4f0] sm:$0xff] }
  0x52   : > { %v1867_v27 = vld [vmem:[%s2281_s24 + $0x5d0] sm:$0xff] }
  0x55   : > { %352 = vrot.lane.b32.xlu1 %v1734_v28, %s2208_s25  ;;  %350 = vrot.lane.b32.xlu0 %v1733_v29, %s2208_s25 }
  0x59   : > { %356 = vrot.lane.b32.xlu1 %v1736_v30, %s2208_s25  ;;  %354 = vrot.lane.b32.xlu0 %v1735_v31, %s2208_s25  ;;  %v1840_v30 = vld [vmem:[%s2281_s24 + $0x4f8] sm:$0xff]  ;;  %v1869_v31 = vld [vmem:[%s2281_s24 + $0x5e0] sm:$0xff] }
  0x5d   : > { %360 = vrot.lane.b32.xlu1 %v1738_v32, %s2208_s25  ;;  %358 = vrot.lane.b32.xlu0 %v1737_v33, %s2208_s25 }
  0x61   : > { %364 = vrot.lane.b32.xlu1 %v1740_v34, %s2208_s25  ;;  %362 = vrot.lane.b32.xlu0 %v1739_v35, %s2208_s25  ;;  %v1841_v34 = vld [vmem:[%s2281_s24 + $0x500] sm:$0xff]  ;;  %v1871_v35 = vld [vmem:[%s2281_s24 + $0x5f0] sm:$0xff] }
  0x65   : > { %368 = vrot.lane.b32.xlu1 %v1742_v36, %s2208_s25  ;;  %366 = vrot.lane.b32.xlu0 %v1741_v37, %s2208_s25 }
  0x69   : > { %372 = vrot.lane.b32.xlu1 %v1744_v38, %s2208_s25  ;;  %370 = vrot.lane.b32.xlu0 %v1743_v39, %s2208_s25  ;;  %v1842_v38 = vld [vmem:[%s2281_s24 + $0x508] sm:$0xff]  ;;  %v1976_v39 = vld [vmem:[%s2281_s24 + $0x7b8] sm:$0xff] }
  0x6d   : > { %376 = vrot.lane.b32.xlu1 %v1746_v40, %s2208_s25  ;;  %374 = vrot.lane.b32.xlu0 %v1745_v41, %s2208_s25 }
  0x71   : > { %380 = vrot.lane.b32.xlu1 %v1748_v42, %s2208_s25  ;;  %378 = vrot.lane.b32.xlu0 %v1747_v43, %s2208_s25  ;;  %v1844_v42 = vld [vmem:[%s2281_s24 + $0x518] sm:$0xff]  ;;  %v1987_v43 = vld [vmem:[%s2281_s24 + $0x810] sm:$0xff] }
  0x75   : > { %384 = vrot.lane.b32.xlu1 %v1750_v44, %s2208_s25  ;;  %382 = vrot.lane.b32.xlu0 %v1749_v45, %s2208_s25 }
  0x79   : > { %388 = vrot.lane.b32.xlu1 %v1752_v46, %s2208_s25  ;;  %386 = vrot.lane.b32.xlu0 %v1751_v47, %s2208_s25  ;;  %v1846_v46 = vld [vmem:[%s2281_s24 + $0x528] sm:$0xff]  ;;  %v1989_v47 = vld [vmem:[%s2281_s24 + $0x820] sm:$0xff] }
  0x7d   : > { %778 = vrot.lane.b32.xlu1 %v1825_v48, %s2208_s25  ;;  %792 = vrot.lane.b32.xlu0 %v1832_v49, %s2208_s25 }
  0x81   : > { %780 = vrot.lane.b32.xlu1 %v1826_v50, %s2208_s25  ;;  %814 = vrot.lane.b32.xlu0 %v1843_v51, %s2208_s25  ;;  %v1848_v50 = vld [vmem:[%s2281_s24 + $0x538] sm:$0xff]  ;;  %v1991_v51 = vld [vmem:[%s2281_s24 + $0x830] sm:$0xff] }
  0x85   : > { %782 = vrot.lane.b32.xlu1 %v1827_v52, %s2208_s25  ;;  %818 = vrot.lane.b32.xlu0 %v1845_v53, %s2208_s25 }
  0x89   : > { %784 = vrot.lane.b32.xlu1 %v1828_v54, %s2208_s25  ;;  %822 = vrot.lane.b32.xlu0 %v1847_v55, %s2208_s25  ;;  %v1850_v54 = vld [vmem:[%s2281_s24 + $0x548] sm:$0xff]  ;;  %v1993_v55 = vld [vmem:[%s2281_s24 + $0x840] sm:$0xff] }
  0x8d   : > { %786 = vrot.lane.b32.xlu1 %v1829_v56, %s2208_s25  ;;  %826 = vrot.lane.b32.xlu0 %v1849_v57, %s2208_s25 }
  0x8f   : > { %v2401_v60 = vpop.permute.xlu0 %294  ;;  %v2403_v61 = vpop.permute.xlu1 %298 }
  0x91   : > { %788 = vrot.lane.b32.xlu1 %v1830_v58, %s2208_s25  ;;  %830 = vrot.lane.b32.xlu0 %v1851_v59, %s2208_s25  ;;  %v1852_v58 = vld [vmem:[%s2281_s24 + $0x558] sm:$0xff]  ;;  %v2001_v59 = vld [vmem:[%s2281_s24 + $0x880] sm:$0xff] }
  0x93   : > { %v2409_v0 = vpop.permute.xlu0 %296  ;;  %v2411_v1 = vpop.permute.xlu1 %300 }
  0x95   : > { %790 = vrot.lane.b32.xlu1 %v1831_v62, %s2208_s25  ;;  %834 = vrot.lane.b32.xlu0 %v1853_v63, %s2208_s25 }
  0x97   : > { %v2417_v4 = vpop.permute.xlu0 %302  ;;  %v2419_v5 = vpop.permute.xlu1 %304 }
  0x99   : > { %794 = vrot.lane.b32.xlu1 %v1833_v2, %s2208_s25  ;;  %838 = vrot.lane.b32.xlu0 %v1855_v3, %s2208_s25  ;;  %v1854_v2 = vld [vmem:[%s2281_s24 + $0x568] sm:$0xff]  ;;  %v2003_v3 = vld [vmem:[%s2281_s24 + $0x890] sm:$0xff] }
  0x9b   : > { %v2425_v8 = vpop.permute.xlu0 %306  ;;  %v2427_v9 = vpop.permute.xlu1 %308 }
  0x9d   : > { %796 = vrot.lane.b32.xlu1 %v1834_v6, %s2208_s25  ;;  %842 = vrot.lane.b32.xlu0 %v1857_v7, %s2208_s25 }
  0x9f   : > { %v2433_v12 = vpop.permute.xlu0 %310  ;;  %v2435_v13 = vpop.permute.xlu1 %312 }
  0xa1   : > { %798 = vrot.lane.b32.xlu1 %v1835_v10, %s2208_s25  ;;  %846 = vrot.lane.b32.xlu0 %v1859_v11, %s2208_s25  ;;  %v1856_v10 = vld [vmem:[%s2281_s24 + $0x578] sm:$0xff]  ;;  %v2005_v11 = vld [vmem:[%s2281_s24 + $0x8a0] sm:$0xff] }
  0xa3   : > { %v2441_v16 = vpop.permute.xlu0 %314  ;;  %v2443_v17 = vpop.permute.xlu1 %316 }
  0xa5   : > { %800 = vrot.lane.b32.xlu1 %v1836_v14, %s2208_s25  ;;  %850 = vrot.lane.b32.xlu0 %v1861_v15, %s2208_s25 }
  0xa7   : > { %v2449_v20 = vpop.permute.xlu0 %318  ;;  %v2451_v21 = vpop.permute.xlu1 %320 }
  0xa9   : > { %802 = vrot.lane.b32.xlu1 %v1837_v18, %s2208_s25  ;;  %854 = vrot.lane.b32.xlu0 %v1863_v19, %s2208_s25  ;;  %v1858_v18 = vld [vmem:[%s2281_s24 + $0x588] sm:$0xff]  ;;  %v2007_v19 = vld [vmem:[%s2281_s24 + $0x8b0] sm:$0xff] }
  0xab   : > { %v2457_v24 = vpop.permute.xlu0 %322  ;;  %v2459_v25 = vpop.permute.xlu1 %324 }
  0xad   : > { %804 = vrot.lane.b32.xlu1 %v1838_v22, %s2208_s25  ;;  %858 = vrot.lane.b32.xlu0 %v1865_v23, %s2208_s25 }
  0xaf   : > { %v2465_v28 = vpop.permute.xlu0 %326  ;;  %v2467_v29 = vpop.permute.xlu1 %328 }
  0xb1   : > { %806 = vrot.lane.b32.xlu1 %v1839_v26, %s2208_s25  ;;  %862 = vrot.lane.b32.xlu0 %v1867_v27, %s2208_s25  ;;  %v1860_v26 = vld [vmem:[%s2281_s24 + $0x598] sm:$0xff]  ;;  %v2009_v27 = vld [vmem:[%s2281_s24 + $0x8c0] sm:$0xff] }
  0xb3   : > { %v2473_v32 = vpop.permute.xlu0 %330  ;;  %v2475_v33 = vpop.permute.xlu1 %332 }
  0xb5   : > { %808 = vrot.lane.b32.xlu1 %v1840_v30, %s2208_s25  ;;  %866 = vrot.lane.b32.xlu0 %v1869_v31, %s2208_s25 }
  0xb7   : > { %v2481_v36 = vpop.permute.xlu0 %334  ;;  %v2483_v37 = vpop.permute.xlu1 %336 }
  0xb9   : > { %810 = vrot.lane.b32.xlu1 %v1841_v34, %s2208_s25  ;;  %870 = vrot.lane.b32.xlu0 %v1871_v35, %s2208_s25  ;;  %v1862_v34 = vld [vmem:[%s2281_s24 + $0x5a8] sm:$0xff]  ;;  %v1995_v35 = vld [vmem:[%s2281_s24 + $0x850] sm:$0xff] }
  0xbb   : > { %v2489_v40 = vpop.permute.xlu0 %338  ;;  %v2491_v41 = vpop.permute.xlu1 %340 }
  0xbd   : > { %812 = vrot.lane.b32.xlu1 %v1842_v38, %s2208_s25  ;;  %1276 = vrot.lane.b32.xlu0 %v1976_v39, %s2208_s25 }
  0xbf   : > { %v2497_v44 = vpop.permute.xlu0 %342  ;;  %v2499_v45 = vpop.permute.xlu1 %344 }
  0xc1   : > { %816 = vrot.lane.b32.xlu1 %v1844_v42, %s2208_s25  ;;  %1298 = vrot.lane.b32.xlu0 %v1987_v43, %s2208_s25  ;;  %v1864_v42 = vld [vmem:[%s2281_s24 + $0x5b8] sm:$0xff] }
  0xc2   : > { %v1996_v43 = vld [vmem:[%s2281_s24 + $0x858] sm:$0xff] }
  0xc3   : > { %v2505_v48 = vpop.permute.xlu0 %346  ;;  %v2507_v49 = vpop.permute.xlu1 %348 }
  0xc4   : > { %3500 = vst [vmem:[#allocation5_spill] sm:$0xff] %v2507_v49 }
  0xc5   : > { %820 = vrot.lane.b32.xlu1 %v1846_v46, %s2208_s25  ;;  %1302 = vrot.lane.b32.xlu0 %v1989_v47, %s2208_s25 }
  0xc7   : > { %v2513_v52 = vpop.permute.xlu0 %350  ;;  %v2515_v53 = vpop.permute.xlu1 %352 }
  0xc8   : > { %3501 = vst [vmem:[#allocation6_spill] sm:$0xff] %v2513_v52  ;;  %3502 = vst [vmem:[#allocation7_spill] sm:$0xff] %v2515_v53  ;;  %v1978_v52 = vld [vmem:[%s2281_s24 + $0x7c8] sm:$0xff] }
  0xc9   : > { %824 = vrot.lane.b32.xlu1 %v1848_v50, %s2208_s25  ;;  %1306 = vrot.lane.b32.xlu0 %v1991_v51, %s2208_s25  ;;  %v1866_v50 = vld [vmem:[%s2281_s24 + $0x5c8] sm:$0xff]  ;;  %v1997_v51 = vld [vmem:[%s2281_s24 + $0x860] sm:$0xff] }
  0xcb   : > { %v2521_v56 = vpop.permute.xlu0 %354  ;;  %v2523_v57 = vpop.permute.xlu1 %356 }
  0xcc   : > { %3503 = vst [vmem:[#allocation8_spill] sm:$0xff] %v2521_v56  ;;  %3504 = vst [vmem:[#allocation9_spill] sm:$0xff] %v2523_v57  ;;  %v1977_v56 = vld [vmem:[%s2281_s24 + $0x7c0] sm:$0xff] }
  0xcd   : > { %828 = vrot.lane.b32.xlu1 %v1850_v54, %s2208_s25  ;;  %1310 = vrot.lane.b32.xlu0 %v1993_v55, %s2208_s25 }
  0xcf   : > { %v2529_v62 = vpop.permute.xlu0 %358  ;;  %v2531_v63 = vpop.permute.xlu1 %360 }
  0xd1   : > { %832 = vrot.lane.b32.xlu1 %v1852_v58, %s2208_s25  ;;  %1326 = vrot.lane.b32.xlu0 %v2001_v59, %s2208_s25  ;;  %v1868_v58 = vld [vmem:[%s2281_s24 + $0x5d8] sm:$0xff]  ;;  %v1998_v59 = vld [vmem:[%s2281_s24 + $0x868] sm:$0xff] }
  0xd3   : > { %v2537_v6 = vpop.permute.xlu0 %362  ;;  %v2539_v7 = vpop.permute.xlu1 %364 }
  0xd5   : > { %836 = vrot.lane.b32.xlu1 %v1854_v2, %s2208_s25  ;;  %1330 = vrot.lane.b32.xlu0 %v2003_v3, %s2208_s25 }
  0xd7   : > { %v2545_v14 = vpop.permute.xlu0 %366  ;;  %v2547_v15 = vpop.permute.xlu1 %368 }
  0xd9   : > { %840 = vrot.lane.b32.xlu1 %v1856_v10, %s2208_s25  ;;  %1334 = vrot.lane.b32.xlu0 %v2005_v11, %s2208_s25  ;;  %v1870_v10 = vld [vmem:[%s2281_s24 + $0x5e8] sm:$0xff]  ;;  %v1999_v11 = vld [vmem:[%s2281_s24 + $0x870] sm:$0xff] }
  0xdb   : > { %v2553_v22 = vpop.permute.xlu0 %370  ;;  %v2555_v23 = vpop.permute.xlu1 %372 }
  0xdd   : > { %844 = vrot.lane.b32.xlu1 %v1858_v18, %s2208_s25  ;;  %1338 = vrot.lane.b32.xlu0 %v2007_v19, %s2208_s25 }
  0xdf   : > { %v2561_v30 = vpop.permute.xlu0 %374  ;;  %v2563_v31 = vpop.permute.xlu1 %376 }
  0xe1   : > { %848 = vrot.lane.b32.xlu1 %v1860_v26, %s2208_s25  ;;  %1342 = vrot.lane.b32.xlu0 %v2009_v27, %s2208_s25  ;;  %v1872_v26 = vld [vmem:[%s2281_s24 + $0x5f8] sm:$0xff] }
  0xe2   : > { %v2000_v27 = vld [vmem:[%s2281_s24 + $0x878] sm:$0xff] }
  0xe3   : > { %v2569_v38 = vpop.permute.xlu0 %378  ;;  %v2571_v39 = vpop.permute.xlu1 %380 }
  0xe5   : > { %852 = vrot.lane.b32.xlu1 %v1862_v34, %s2208_s25  ;;  %1314 = vrot.lane.b32.xlu0 %v1995_v35, %s2208_s25 }
  0xe7   : > { %v2577_v46 = vpop.permute.xlu0 %382  ;;  %v2579_v47 = vpop.permute.xlu1 %384 }
  0xe9   : > { %856 = vrot.lane.b32.xlu1 %v1864_v42, %s2208_s25  ;;  %1316 = vrot.lane.b32.xlu0 %v1996_v43, %s2208_s25  ;;  %v1969_v42 = vld [vmem:[%s2281_s24 + $0x780] sm:$0xff] }
  0xeb   : > { %v2585_v54 = vpop.permute.xlu0 %386  ;;  %v2587_v55 = vpop.permute.xlu1 %388 }
  0xed   : > { %860 = vrot.lane.b32.xlu1 %v1866_v50, %s2208_s25  ;;  %1318 = vrot.lane.b32.xlu0 %v1997_v51, %s2208_s25  ;;  %v1970_v51 = vld [vmem:[%s2281_s24 + $0x788] sm:$0xff] }
  0xef   : > { %v2593_v2 = vpop.permute.xlu0 %792  ;;  %v2595_v3 = vpop.permute.xlu1 %778 }
  0xf1   : > { %864 = vrot.lane.b32.xlu1 %v1868_v58, %s2208_s25  ;;  %1320 = vrot.lane.b32.xlu0 %v1998_v59, %s2208_s25 }
  0xf3   : > { %v2601_v18 = vpop.permute.xlu0 %814  ;;  %v2603_v19 = vpop.permute.xlu1 %780 }
  0xf4   : > { %3505 = vst [vmem:[#allocation10_spill] sm:$0xff] %v2601_v18 }
  0xf5   : > { %868 = vrot.lane.b32.xlu1 %v1870_v10, %s2208_s25  ;;  %1322 = vrot.lane.b32.xlu0 %v1999_v11, %s2208_s25  ;;  %v1971_v10 = vld [vmem:[%s2281_s24 + $0x790] sm:$0xff] }
  0xf7   : > { %v2609_v34 = vpop.permute.xlu0 %818  ;;  %v2611_v35 = vpop.permute.xlu1 %782 }
  0xf8   : > { %3506 = vst [vmem:[#allocation11_spill] sm:$0xff] %v2609_v34 }
  0xf9   : > { %872 = vrot.lane.b32.xlu1 %v1872_v26, %s2208_s25  ;;  %1324 = vrot.lane.b32.xlu0 %v2000_v27, %s2208_s25  ;;  %v1972_v27 = vld [vmem:[%s2281_s24 + $0x798] sm:$0xff] }
  0xfb   : > { %v2616_v43 = vpop.permute.xlu0 %822  ;;  %v2618_v50 = vpop.permute.xlu1 %784 }
  0xfc   : > { %3507 = vst [vmem:[#allocation12_spill] sm:$0xff] %v2616_v43 }
  0xfd   : > { %1262 = vrot.lane.b32.xlu1 %v1969_v42, %s2208_s25 }
  0xff   : > { %v2622_v58 = vpop.permute.xlu0 %826  ;;  %v2624_v59 = vpop.permute.xlu1 %786 }
 0x100   : > { %3508 = vst [vmem:[#allocation13_spill] sm:$0xff] %v2622_v58  ;;  %v1973_v58 = vld [vmem:[%s2281_s24 + $0x7a0] sm:$0xff] }
 0x101   : > { %1264 = vrot.lane.b32.xlu1 %v1970_v51, %s2208_s25 }
 0x103   : > { %v2628_v11 = vpop.permute.xlu0 %830  ;;  %v2630_v26 = vpop.permute.xlu1 %788 }
 0x104   : > { %3509 = vst [vmem:[#allocation14_spill] sm:$0xff] %v2628_v11  ;;  %v1974_v11 = vld [vmem:[%s2281_s24 + $0x7a8] sm:$0xff] }
 0x105   : > { %1266 = vrot.lane.b32.xlu1 %v1971_v10, %s2208_s25 }
 0x107   : > { %v2634_v43 = vpop.permute.xlu0 %834  ;;  %v2636_v42 = vpop.permute.xlu1 %790 }
 0x108   : > { %3510 = vst [vmem:[#allocation15_spill] sm:$0xff] %v2634_v43  ;;  %v1975_v43 = vld [vmem:[%s2281_s24 + $0x7b0] sm:$0xff] }
 0x109   : > { %1268 = vrot.lane.b32.xlu1 %v1972_v27, %s2208_s25  ;;  %v149_v27 = vld [vmem:[%s2281_s24] sm:$0xff] }
 0x10b   : > { %v2640_v34 = vpop.permute.xlu0 %838  ;;  %v2642_v51 = vpop.permute.xlu1 %794 }
 0x10c   : > { %3511 = vst [vmem:[#allocation16_spill] sm:$0xff] %v2640_v34 }
 0x10d   : > { %1270 = vrot.lane.b32.xlu1 %v1973_v58, %s2208_s25  ;;  %v439_v58 = vsel %vm438_vm0, %v149_v27, %v2401_v60  ;;  %v151_v60 = vld [vmem:[%s2281_s24 + $0x10] sm:$0xff] }
 0x10f   : > { %v2646_v18 = vpop.permute.xlu0 %842  ;;  %v2648_v10 = vpop.permute.xlu1 %796 }
 0x110   : > { %3512 = vst [vmem:[#allocation17_spill] sm:$0xff] %v2646_v18 }
 0x111   : > { %1272 = vrot.lane.b32.xlu1 %v1974_v11, %s2208_s25  ;;  %v150_v11 = vld [vmem:[%s2281_s24 + $0x8] sm:$0xff] }
 0x113   : > { %v2652_v57 = vpop.permute.xlu0 %846  ;;  %v2655_v34 = vpop.permute.xlu1 %798 }
 0x114   : > { %3513 = vst [vmem:[#allocation18_spill] sm:$0xff] %v2652_v57  ;;  %v440_v57 = vsel %vm438_vm0, %v150_v11, %v2409_v0  ;;  %v152_v0 = vld [vmem:[%s2281_s24 + $0x18] sm:$0xff] }
 0x115   : > { %1274 = vrot.lane.b32.xlu1 %v1975_v43, %s2208_s25 }
 0x117   : > { %v2661_v18 = vpop.permute.xlu0 %850  ;;  %487 = vxpose.xlu0.b32.start [1/16] %v439_v58, 128  ;;  %v2664_v53 = vpop.permute.xlu1 %800  ;;  %v441_v58 = vsel %vm438_vm0, %v151_v60, %v2403_v61  ;;  %v153_v61 = vld [vmem:[%s2281_s24 + $0x20] sm:$0xff] }
 0x118   : > { %3514 = vst [vmem:[#allocation19_spill] sm:$0xff] %v2661_v18  ;;  %v1979_v18 = vld [vmem:[%s2281_s24 + $0x7d0] sm:$0xff] }
 0x119   : > { %1278 = vrot.lane.b32.xlu1 %v1977_v56, %s2208_s25 }
 0x11b   : > { %v2670_v43 = vpop.permute.xlu0 %854  ;;  %488 = vxpose.xlu0.b32.cont [2/16] %v440_v57, 128  ;;  %v2673_v27 = vpop.permute.xlu1 %802  ;;  %v442_v57 = vsel %vm438_vm0, %v152_v0, %v2411_v1 }
 0x11c   : > { %3515 = vst [vmem:[#allocation20_spill] sm:$0xff] %v2670_v43  ;;  %v1980_v43 = vld [vmem:[%s2281_s24 + $0x7d8] sm:$0xff] }
 0x11d   : > { %1280 = vrot.lane.b32.xlu1 %v1978_v52, %s2208_s25 }
 0x11f   : > { %v2679_v56 = vpop.permute.xlu0 %858  ;;  %489 = vxpose.xlu0.b32.cont [3/16] %v441_v58, 128  ;;  %v2682_v11 = vpop.permute.xlu1 %804  ;;  %v443_v58 = vsel %vm438_vm0, %v153_v61, %v2417_v4  ;;  %v1983_v61 = vld [vmem:[%s2281_s24 + $0x7f0] sm:$0xff] }
 0x120   : > { %3516 = vst [vmem:[#allocation21_spill] sm:$0xff] %v2679_v56  ;;  %v1981_v56 = vld [vmem:[%s2281_s24 + $0x7e0] sm:$0xff] }
 0x121   : > { %1282 = vrot.lane.b32.xlu1 %v1979_v18, %s2208_s25  ;;  %v154_v18 = vld [vmem:[%s2281_s24 + $0x28] sm:$0xff] }
 0x122   : > { %v444_v0 = vsel %vm438_vm0, %v154_v18, %v2419_v5  ;;  %v1984_v18 = vld [vmem:[%s2281_s24 + $0x7f8] sm:$0xff] }
 0x123   : > { %v2688_v52 = vpop.permute.xlu0 %862  ;;  %490 = vxpose.xlu0.b32.cont [4/16] %v442_v57, 128  ;;  %v2691_v60 = vpop.permute.xlu1 %806  ;;  %v1982_v57 = vld [vmem:[%s2281_s24 + $0x7e8] sm:$0xff] }
 0x124   : > { %3517 = vst [vmem:[#allocation22_spill] sm:$0xff] %v2688_v52 }
 0x125   : > { %1284 = vrot.lane.b32.xlu1 %v1980_v43, %s2208_s25  ;;  %v155_v43 = vld [vmem:[%s2281_s24 + $0x30] sm:$0xff] }
 0x126   : > { %v445_v4 = vsel %vm438_vm0, %v155_v43, %v2425_v8 }
 0x127   : > { %491 = vxpose.xlu0.b32.cont [5/16] %v443_v58, 128  ;;  %v2698_v49 = vpop.permute.xlu1 %808  ;;  %v2700_v1 = vpop.permute.xlu0 %866 }
 0x128   : > { %3518 = vst [vmem:[#allocation23_spill] sm:$0xff] %v2700_v1 }
 0x129   : > { %1286 = vrot.lane.b32.xlu1 %v1981_v56, %s2208_s25  ;;  %v156_v56 = vld [vmem:[%s2281_s24 + $0x38] sm:$0xff] }
 0x12a   : > { %v446_v5 = vsel %vm438_vm0, %v156_v56, %v2427_v9  ;;  %v1986_v56 = vld [vmem:[%s2281_s24 + $0x808] sm:$0xff] }
 0x12b   : > { %492 = vxpose.xlu0.b32.cont [6/16] %v444_v0, 128  ;;  %v2707_v52 = vpop.permute.xlu1 %810  ;;  %v2713_v58 = vpop.permute.xlu0 %870  ;;  %v157_v0 = vld [vmem:[%s2281_s24 + $0x40] sm:$0xff] }
 0x12c   : > { %3519 = vst [vmem:[#allocation24_spill] sm:$0xff] %v2713_v58  ;;  %v447_v43 = vsel %vm438_vm0, %v157_v0, %v2433_v12  ;;  %v1988_v0 = vld [vmem:[%s2281_s24 + $0x818] sm:$0xff] }
 0x12d   : > { %1288 = vrot.lane.b32.xlu1 %v1982_v57, %s2208_s25 }
 0x12f   : > { %493 = vxpose.xlu0.b32.cont [7/16] %v445_v4, 128  ;;  %v2716_v1 = vpop.permute.xlu1 %812  ;;  %v2725_v8 = vpop.permute.xlu0 %1276  ;;  %v1985_v4 = vld [vmem:[%s2281_s24 + $0x800] sm:$0xff] }
 0x130   : > { %3520 = vst [vmem:[#allocation25_spill] sm:$0xff] %v2725_v8 }
 0x131   : > { %1290 = vrot.lane.b32.xlu1 %v1983_v61, %s2208_s25  ;;  %v158_v61 = vld [vmem:[%s2281_s24 + $0x48] sm:$0xff] }
 0x132   : > { %v448_v9 = vsel %vm438_vm0, %v158_v61, %v2435_v13 }
 0x133   : > { %494 = vxpose.xlu0.b32.cont [8/16] %v446_v5, 128  ;;  %v2723_v57 = vpop.permute.xlu1 %816  ;;  %v2738_v5 = vpop.permute.xlu0 %1298 }
 0x134   : > { %3521 = vst [vmem:[#allocation26_spill] sm:$0xff] %v2738_v5 }
 0x135   : > { %1292 = vrot.lane.b32.xlu1 %v1984_v18, %s2208_s25  ;;  %v159_v18 = vld [vmem:[%s2281_s24 + $0x50] sm:$0xff] }
 0x136   : > { %v449_v12 = vsel %vm438_vm0, %v159_v18, %v2441_v16  ;;  %v1992_v18 = vld [vmem:[%s2281_s24 + $0x838] sm:$0xff] }
 0x137   : > { %495 = vxpose.xlu0.b32.cont [9/16] %v447_v43, 128  ;;  %v2732_v58 = vpop.permute.xlu1 %820  ;;  %v160_v43 = vld [vmem:[%s2281_s24 + $0x58] sm:$0xff]  ;;  %v2750_v13 = vpop.permute.xlu0 %1302 }
 0x138   : > { %3522 = vst [vmem:[#allocation27_spill] sm:$0xff] %v2750_v13  ;;  %v450_v61 = vsel %vm438_vm0, %v160_v43, %v2443_v17  ;;  %v1994_v43 = vld [vmem:[%s2281_s24 + $0x848] sm:$0xff] }
 0x139   : > { %1294 = vrot.lane.b32.xlu1 %v1985_v4, %s2208_s25 }
 0x13b   : > { %496 = vxpose.xlu0.b32.cont [10/16] %v448_v9, 128  ;;  %v2741_v8 = vpop.permute.xlu1 %824  ;;  %v1990_v9 = vld [vmem:[%s2281_s24 + $0x828] sm:$0xff] }
 0x13d   : > { %1296 = vrot.lane.b32.xlu1 %v1986_v56, %s2208_s25  ;;  %v161_v56 = vld [vmem:[%s2281_s24 + $0x60] sm:$0xff] }
 0x13e   : > { %v451_v16 = vsel %vm438_vm0, %v161_v56, %v2449_v20 }
 0x13f   : > { %497 = vxpose.xlu0.b32.cont [11/16] %v449_v12, 128  ;;  %v2748_v4 = vpop.permute.xlu1 %828  ;;  %v2763_v12 = vpop.permute.xlu0 %1306 }
 0x140   : > { %3523 = vst [vmem:[#allocation28_spill] sm:$0xff] %v2763_v12 }
 0x141   : > { %1300 = vrot.lane.b32.xlu1 %v1988_v0, %s2208_s25  ;;  %v162_v0 = vld [vmem:[%s2281_s24 + $0x68] sm:$0xff] }
 0x142   : > { %v452_v17 = vsel %vm438_vm0, %v162_v0, %v2451_v21  ;;  %v2004_v0 = vld [vmem:[%s2281_s24 + $0x898] sm:$0xff] }
 0x143   : > { %498 = vxpose.xlu0.b32.cont [12/16] %v450_v61, 128  ;;  %v2757_v5 = vpop.permute.xlu1 %832  ;;  %v163_v61 = vld [vmem:[%s2281_s24 + $0x70] sm:$0xff]  ;;  %v2775_v20 = vpop.permute.xlu0 %1310 }
 0x144   : > { %3524 = vst [vmem:[#allocation29_spill] sm:$0xff] %v2775_v20  ;;  %v453_v56 = vsel %vm438_vm0, %v163_v61, %v2457_v24  ;;  %v2006_v61 = vld [vmem:[%s2281_s24 + $0x8a8] sm:$0xff] }
 0x145   : > { %1304 = vrot.lane.b32.xlu1 %v1990_v9, %s2208_s25 }
 0x147   : > { %499 = vxpose.xlu0.b32.cont [13/16] %v451_v16, 128  ;;  %v2766_v13 = vpop.permute.xlu1 %836  ;;  %v2002_v16 = vld [vmem:[%s2281_s24 + $0x888] sm:$0xff] }
 0x149   : > { %1308 = vrot.lane.b32.xlu1 %v1992_v18, %s2208_s25  ;;  %v164_v18 = vld [vmem:[%s2281_s24 + $0x78] sm:$0xff] }
 0x14a   : > { %v454_v21 = vsel %vm438_vm0, %v164_v18, %v2459_v25 }
 0x14b   : > { %500 = vxpose.xlu0.b32.cont [14/16] %v452_v17, 128  ;;  %v2773_v9 = vpop.permute.xlu1 %840  ;;  %v2788_v17 = vpop.permute.xlu0 %1326 }
 0x14c   : > { %3525 = vst [vmem:[#allocation30_spill] sm:$0xff] %v2788_v17 }
 0x14d   : > { %1312 = vrot.lane.b32.xlu1 %v1994_v43, %s2208_s25  ;;  %v181_v43 = vld [vmem:[%s2281_s24 + $0x100] sm:$0xff] }
 0x14e   : > { %v471_v24 = vsel %vm438_vm0, %v181_v43, %v2529_v62  ;;  %v2010_v43 = vld [vmem:[%s2281_s24 + $0x8c8] sm:$0xff] }
 0x14f   : > { %501 = vxpose.xlu0.b32.cont [15/16] %v453_v56, 128  ;;  %v2782_v12 = vpop.permute.xlu1 %844  ;;  %v182_v56 = vld [vmem:[%s2281_s24 + $0x108] sm:$0xff]  ;;  %v2800_v25 = vpop.permute.xlu0 %1330 }
 0x150   : > { %3526 = vst [vmem:[#allocation31_spill] sm:$0xff] %v2800_v25  ;;  %v472_v18 = vsel %vm438_vm0, %v182_v56, %v2531_v63  ;;  %v2011_v56 = vld [vmem:[%s2281_s24 + $0x8d0] sm:$0xff] }
 0x151   : > { %1328 = vrot.lane.b32.xlu1 %v2002_v16, %s2208_s25 }
 0x153   : > { %502 = vxpose.xlu0.b32.end [16/16] %v454_v21, 128  ;;  %v2791_v20 = vpop.permute.xlu1 %848  ;;  %v2008_v21 = vld [vmem:[%s2281_s24 + $0x8b8] sm:$0xff] }
 0x155   : > { %1332 = vrot.lane.b32.xlu1 %v2004_v0, %s2208_s25  ;;  %v183_v0 = vld [vmem:[%s2281_s24 + $0x110] sm:$0xff] }
 0x156   : > { %v473_v62 = vsel %vm438_vm0, %v183_v0, %v2537_v6 }
 0x157   : > { %551 = vxpose.xlu0.b32.start [1/16] %v471_v24, 128  ;;  %v2798_v16 = vpop.permute.xlu1 %852  ;;  %v2813_v24 = vpop.permute.xlu0 %1334 }
 0x158   : > { %3527 = vst [vmem:[#allocation32_spill] sm:$0xff] %v2813_v24 }
 0x159   : > { %1336 = vrot.lane.b32.xlu1 %v2006_v61, %s2208_s25  ;;  %v184_v61 = vld [vmem:[%s2281_s24 + $0x118] sm:$0xff] }
 0x15a   : > { %v474_v63 = vsel %vm438_vm0, %v184_v61, %v2539_v7  ;;  %v2013_v61 = vld [vmem:[%s2281_s24 + $0x8e0] sm:$0xff] }
 0x15b   : > { %552 = vxpose.xlu0.b32.cont [2/16] %v472_v18, 128  ;;  %v2807_v17 = vpop.permute.xlu1 %856  ;;  %v185_v18 = vld [vmem:[%s2281_s24 + $0x120] sm:$0xff]  ;;  %v2825_v6 = vpop.permute.xlu0 %1338 }
 0x15c   : > { %3528 = vst [vmem:[#allocation33_spill] sm:$0xff] %v2825_v6  ;;  %v475_v0 = vsel %vm438_vm0, %v185_v18, %v2545_v14  ;;  %v2014_v18 = vld [vmem:[%s2281_s24 + $0x8e8] sm:$0xff] }
 0x15d   : > { %1340 = vrot.lane.b32.xlu1 %v2008_v21, %s2208_s25 }
 0x15f   : > { %553 = vxpose.xlu0.b32.cont [3/16] %v473_v62, 128  ;;  %v2816_v25 = vpop.permute.xlu1 %860  ;;  %v2012_v62 = vld [vmem:[%s2281_s24 + $0x8d8] sm:$0xff] }
 0x161   : > { %1344 = vrot.lane.b32.xlu1 %v2010_v43, %s2208_s25  ;;  %v186_v43 = vld [vmem:[%s2281_s24 + $0x128] sm:$0xff] }
 0x162   : > { %v476_v7 = vsel %vm438_vm0, %v186_v43, %v2547_v15 }
 0x163   : > { %554 = vxpose.xlu0.b32.cont [4/16] %v474_v63, 128  ;;  %v2823_v21 = vpop.permute.xlu1 %864  ;;  %v2838_v63 = vpop.permute.xlu0 %1342 }
 0x164   : > { %3529 = vst [vmem:[#allocation34_spill] sm:$0xff] %v2838_v63 }
 0x165   : > { %1346 = vrot.lane.b32.xlu1 %v2011_v56, %s2208_s25  ;;  %v187_v56 = vld [vmem:[%s2281_s24 + $0x130] sm:$0xff] }
 0x166   : > { %v477_v14 = vsel %vm438_vm0, %v187_v56, %v2553_v22  ;;  %v2016_v56 = vld [vmem:[%s2281_s24 + $0x8f8] sm:$0xff] }
 0x167   : > { %555 = vxpose.xlu0.b32.cont [5/16] %v475_v0, 128  ;;  %v2832_v24 = vpop.permute.xlu1 %868  ;;  %v188_v0 = vld [vmem:[%s2281_s24 + $0x138] sm:$0xff]  ;;  %v2850_v15 = vpop.permute.xlu0 %1314 }
 0x168   : > { %3530 = vst [vmem:[#allocation35_spill] sm:$0xff] %v2850_v15  ;;  %v478_v43 = vsel %vm438_vm0, %v188_v0, %v2555_v23  ;;  %v191_v0 = vld [vmem:[%s2281_s24 + $0x150] sm:$0xff] }
 0x169   : > { %1348 = vrot.lane.b32.xlu1 %v2012_v62, %s2208_s25 }
 0x16b   : > { %556 = vxpose.xlu0.b32.cont [6/16] %v476_v7, 128  ;;  %v2841_v6 = vpop.permute.xlu1 %872  ;;  %v2015_v7 = vld [vmem:[%s2281_s24 + $0x8f0] sm:$0xff] }
 0x16d   : > { %1350 = vrot.lane.b32.xlu1 %v2013_v61, %s2208_s25  ;;  %v189_v61 = vld [vmem:[%s2281_s24 + $0x140] sm:$0xff] }
 0x16e   : > { %v479_v22 = vsel %vm438_vm0, %v189_v61, %v2561_v30  ;;  %v481_v30 = vsel %vm438_vm0, %v191_v0, %v2569_v38  ;;  %v192_v61 = vld [vmem:[%s2281_s24 + $0x158] sm:$0xff]  ;;  %v194_v38 = vld [vmem:[%s2281_s24 + $0x168] sm:$0xff] }
 0x16f   : > { %557 = vxpose.xlu0.b32.cont [7/16] %v477_v14, 128  ;;  %v2848_v62 = vpop.permute.xlu1 %1262  ;;  %v2863_v14 = vpop.permute.xlu0 %1316 }
 0x171   : > { %1352 = vrot.lane.b32.xlu1 %v2014_v18, %s2208_s25  ;;  %v190_v18 = vld [vmem:[%s2281_s24 + $0x148] sm:$0xff] }
 0x172   : > { %v480_v23 = vsel %vm438_vm0, %v190_v18, %v2563_v31  ;;  %v482_v31 = vsel %vm438_vm0, %v192_v61, %v2571_v39  ;;  %v193_v18 = vld [vmem:[%s2281_s24 + $0x160] sm:$0xff]  ;;  %v484_v39 = vsel %vm438_vm0, %v194_v38, %v2579_v47  ;;  %v195_v61 = vld [vmem:[%s2281_s24 + $0x170] sm:$0xff] }
 0x173   : > { %558 = vxpose.xlu0.b32.cont [8/16] %v478_v43, 128  ;;  %v2857_v63 = vpop.permute.xlu1 %1264 }
 0x175   : > { %1354 = vrot.lane.b32.xlu1 %v2015_v7, %s2208_s25  ;;  %v2874_v7 = vpop.permute.xlu0 %1318 }
 0x176   : > { %3531 = vst [vmem:[#allocation36_spill] sm:$0xff] %v2874_v7  ;;  %v483_v7 = vsel %vm438_vm0, %v193_v18, %v2577_v46  ;;  %v485_v46 = vsel %vm438_vm0, %v195_v61, %v2585_v54  ;;  %v196_v18 = vld [vmem:[%s2281_s24 + $0x178] sm:$0xff] }
 0x177   : > { %559 = vxpose.xlu0.b32.cont [9/16] %v479_v22, 128  ;;  %v2866_v15 = vpop.permute.xlu1 %1266  ;;  %v486_v47 = vsel %vm438_vm0, %v196_v18, %v2587_v55  ;;  %v1778_v55 = vld [vmem:[%s2281_s24 + $0x308] sm:$0xff] }
 0x178   : > { %v923_v18 = vsel %vm438_vm0, %v1778_v55, %v2603_v19 }
 0x179   : > { %1356 = vrot.lane.b32.xlu1 %v2016_v56, %s2208_s25  ;;  %v2883_v56 = vpop.permute.xlu0 %1320 }
 0x17a   : > { %3532 = vst [vmem:[#allocation37_spill] sm:$0xff] %v2883_v56 }
 0x17b   : > { %560 = vxpose.xlu0.b32.cont [10/16] %v480_v23, 128  ;;  %v2872_v43 = vpop.permute.xlu1 %1268 }
 0x17f   : > { %561 = vxpose.xlu0.b32.cont [11/16] %v481_v30, 128  ;;  %v2879_v22 = vpop.permute.xlu1 %1270  ;;  %v2893_v30 = vpop.permute.xlu0 %1322 }
 0x183   : > { %562 = vxpose.xlu0.b32.cont [12/16] %v482_v31, 128  ;;  %v2886_v23 = vpop.permute.xlu1 %1272 }
 0x187   : > { %563 = vxpose.xlu0.b32.cont [13/16] %v483_v7, 128  ;;  %v2891_v0 = vpop.permute.xlu1 %1274  ;;  %v2905_v7 = vpop.permute.xlu0 %1324 }
 0x188   : > { %3533 = vst [vmem:[#allocation38_spill] sm:$0xff] %v2905_v7  ;;  %v1779_v7 = vld [vmem:[%s2281_s24 + $0x310] sm:$0xff] }
 0x18b   : > { %564 = vxpose.xlu0.b32.cont [14/16] %v484_v39, 128  ;;  %v2899_v31 = vpop.permute.xlu1 %1278  ;;  %v1777_v39 = vld [vmem:[%s2281_s24 + $0x300] sm:$0xff] }
 0x18c   : > { %v922_v54 = vsel %vm438_vm0, %v1777_v39, %v2595_v3  ;;  %v924_v3 = vsel %vm438_vm0, %v1779_v7, %v2611_v35  ;;  %v165_v39 = vld [vmem:[%s2281_s24 + $0x80] sm:$0xff] }
 0x18d   : > { %v455_v19 = vsel %vm438_vm0, %v165_v39, %v2465_v28  ;;  %v1781_v7 = vld [vmem:[%s2281_s24 + $0x320] sm:$0xff]  ;;  %v167_v39 = vld [vmem:[%s2281_s24 + $0x90] sm:$0xff] }
 0x18e   : > { %v926_v28 = vsel %vm438_vm0, %v1781_v7, %v2624_v59  ;;  %v169_v7 = vld [vmem:[%s2281_s24 + $0xa0] sm:$0xff] }
 0x18f   : > { %565 = vxpose.xlu0.b32.cont [15/16] %v485_v46, 128  ;;  %v2908_v56 = vpop.permute.xlu1 %1280 }
 0x193   : > { %566 = vxpose.xlu0.b32.end [16/16] %v486_v47, 128  ;;  %v503_v38 = vpop.trf.xlu0  ;;  %v2918_v61 = vpop.permute.xlu1 %1282 }
 0x194   : > { %583 = vst [vmem:[%s2913_s28] sm:$0xff] %v503_v38 }
 0x197   : > { %970 = vxpose.xlu0.b32.start [1/16] %v922_v54, 128  ;;  %v504_v46 = vpop.trf.xlu0  ;;  %v2926_v38 = vpop.permute.xlu1 %1284 }
 0x198   : > { %586 = vst [vmem:[%s2913_s28 + $0x18] sm:$0xff] %v504_v46  ;;  %v1780_v46 = vld [vmem:[%s2281_s24 + $0x318] sm:$0xff] }
 0x199   : > { %v925_v55 = vsel %vm438_vm0, %v1780_v46, %v2618_v50 }
 0x19b   : > { %971 = vxpose.xlu0.b32.cont [2/16] %v923_v18, 128  ;;  %v505_v47 = vpop.trf.xlu0  ;;  %v166_v18 = vld [vmem:[%s2281_s24 + $0x88] sm:$0xff] }
 0x19c   : > { %589 = vst [vmem:[%s2913_s28 + $0x30] sm:$0xff] %v505_v47  ;;  %v2938_v47 = vpop.permute.xlu1 %1286 }
 0x19f   : > { %972 = vxpose.xlu0.b32.cont [3/16] %v924_v3, 128  ;;  %v506_v54 = vpop.trf.xlu0  ;;  %v456_v3 = vsel %vm438_vm0, %v166_v18, %v2467_v29  ;;  %v1783_v18 = vld [vmem:[%s2281_s24 + $0x330] sm:$0xff] }
 0x1a0   : > { %592 = vst [vmem:[%s2913_s28 + $0x48] sm:$0xff] %v506_v54  ;;  %v1782_v54 = vld [vmem:[%s2281_s24 + $0x328] sm:$0xff]  ;;  %v2949_v46 = vpop.permute.xlu1 %1288 }
 0x1a1   : > { %v927_v29 = vsel %vm438_vm0, %v1782_v54, %v2630_v26  ;;  %v1785_v54 = vld [vmem:[%s2281_s24 + $0x340] sm:$0xff] }
 0x1a2   : > { %519 = vxpose.xlu1.b32.start [1/16] %v455_v19, 128  ;;  %v457_v19 = vsel %vm438_vm0, %v167_v39, %v2473_v32  ;;  %v928_v32 = vsel %vm438_vm0, %v1783_v18, %v2636_v42  ;;  %v459_v39 = vsel %vm438_vm0, %v169_v7, %v2481_v36  ;;  %v930_v36 = vsel %vm438_vm0, %v1785_v54, %v2642_v51  ;;  %v1787_v7 = vld [vmem:[%s2281_s24 + $0x350] sm:$0xff]  ;;  %v1789_v54 = vld [vmem:[%s2281_s24 + $0x360] sm:$0xff] }
 0x1a3   : > { %973 = vxpose.xlu0.b32.cont [4/16] %v925_v55, 128  ;;  %v507_v35 = vpop.trf.xlu0  ;;  %v168_v55 = vld [vmem:[%s2281_s24 + $0x98] sm:$0xff] }
 0x1a4   : > { %595 = vst [vmem:[%s2913_s28 + $0x60] sm:$0xff] %v507_v35  ;;  %v458_v35 = vsel %vm438_vm0, %v168_v55, %v2475_v33  ;;  %v171_v55 = vld [vmem:[%s2281_s24 + $0xb0] sm:$0xff] }
 0x1a5   : > { %v461_v18 = vsel %vm438_vm0, %v171_v55, %v2489_v40  ;;  %v932_v40 = vsel %vm438_vm0, %v1787_v7, %v2655_v34 }
 0x1a6   : > { %520 = vxpose.xlu1.b32.cont [2/16] %v456_v3, 128  ;;  %v2963_v3 = vpop.permute.xlu1 %1290 }
 0x1a7   : > { %974 = vxpose.xlu0.b32.cont [5/16] %v926_v28, 128  ;;  %v508_v50 = vpop.trf.xlu0  ;;  %v1784_v28 = vld [vmem:[%s2281_s24 + $0x338] sm:$0xff] }
 0x1a8   : > { %598 = vst [vmem:[%s2913_s28 + $0x78] sm:$0xff] %v508_v50  ;;  %v929_v33 = vsel %vm438_vm0, %v1784_v28, %v2593_v2  ;;  %v170_v50 = vld [vmem:[%s2281_s24 + $0xa8] sm:$0xff]  ;;  %v173_v28 = vld [vmem:[%s2281_s24 + $0xc0] sm:$0xff] }
 0x1aa   : > { %521 = vxpose.xlu1.b32.cont [3/16] %v457_v19, 128  ;;  %v2974_v19 = vpop.permute.xlu1 %1292 }
 0x1ab   : > { %975 = vxpose.xlu0.b32.cont [6/16] %v927_v29, 128  ;;  %v509_v59 = vpop.trf.xlu0  ;;  %v460_v29 = vsel %vm438_vm0, %v170_v50, %v2483_v37  ;;  %v463_v50 = vsel %vm438_vm0, %v173_v28, %v2497_v44  ;;  %v934_v44 = vsel %vm438_vm0, %v1789_v54, %v2673_v27  ;;  %v3535_v28 = vld [vmem:[#allocation6_spill] sm:$0xff] }
 0x1ac   : > { %601 = vst [vmem:[%s2913_s28 + $0x90] sm:$0xff] %v509_v59  ;;  %v1786_v59 = vld [vmem:[%s2281_s24 + $0x348] sm:$0xff] }
 0x1ad   : > { %v931_v37 = vsel %vm438_vm0, %v1786_v59, %v2648_v10 }
 0x1ae   : > { %522 = vxpose.xlu1.b32.cont [4/16] %v458_v35, 128  ;;  %v172_v35 = vld [vmem:[%s2281_s24 + $0xb8] sm:$0xff] }
 0x1af   : > { %976 = vxpose.xlu0.b32.cont [7/16] %v928_v32, 128  ;;  %v510_v26 = vpop.trf.xlu0  ;;  %v2988_v32 = vpop.permute.xlu1 %1294 }
 0x1b0   : > { %604 = vst [vmem:[%s2913_s28 + $0xa8] sm:$0xff] %v510_v26  ;;  %v462_v26 = vsel %vm438_vm0, %v172_v35, %v2491_v41 }
 0x1b2   : > { %523 = vxpose.xlu1.b32.cont [5/16] %v459_v39, 128  ;;  %v1788_v39 = vld [vmem:[%s2281_s24 + $0x358] sm:$0xff] }
 0x1b3   : > { %977 = vxpose.xlu0.b32.cont [8/16] %v929_v33, 128  ;;  %v511_v42 = vpop.trf.xlu0  ;;  %v2999_v33 = vpop.permute.xlu1 %1296  ;;  %v933_v41 = vsel %vm438_vm0, %v1788_v39, %v2664_v53 }
 0x1b4   : > { %1753 = vst [vmem:[%s2913_s28 + $0xc0] sm:$0xff] %v511_v42  ;;  %v174_v42 = vld [vmem:[%s2281_s24 + $0xc8] sm:$0xff] }
 0x1b6   : > { %524 = vxpose.xlu1.b32.cont [6/16] %v460_v29, 128  ;;  %v464_v29 = vsel %vm438_vm0, %v174_v42, %v2499_v45  ;;  %v1809_v42 = vld [vmem:[%s2281_s24 + $0x400] sm:$0xff] }
 0x1b7   : > { %978 = vxpose.xlu0.b32.cont [9/16] %v930_v36, 128  ;;  %v512_v2 = vpop.trf.xlu0  ;;  %v175_v36 = vld [vmem:[%s2281_s24 + $0xd0] sm:$0xff]  ;;  %v3013_v55 = vpop.permute.xlu1 %1300 }
 0x1b8   : > { %1756 = vst [vmem:[%s2913_s28 + $0xd8] sm:$0xff] %v512_v2  ;;  %v1790_v2 = vld [vmem:[%s2281_s24 + $0x368] sm:$0xff]  ;;  %v465_v59 = vsel %vm438_vm0, %v175_v36, %v2505_v48  ;;  %v179_v36 = vld [vmem:[%s2281_s24 + $0xf0] sm:$0xff] }
 0x1b9   : > { %v935_v45 = vsel %vm438_vm0, %v1790_v2, %v2682_v11 }
 0x1ba   : > { %525 = vxpose.xlu1.b32.cont [7/16] %v461_v18, 128  ;;  %v176_v18 = vld [vmem:[%s2281_s24 + $0xd8] sm:$0xff] }
 0x1bb   : > { %979 = vxpose.xlu0.b32.cont [10/16] %v931_v37, 128  ;;  %v513_v51 = vpop.trf.xlu0  ;;  %v1791_v37 = vld [vmem:[%s2281_s24 + $0x370] sm:$0xff]  ;;  %v3024_v35 = vpop.permute.xlu1 %1304 }
 0x1bc   : > { %1759 = vst [vmem:[%s2913_s28 + $0xf0] sm:$0xff] %v513_v51  ;;  %v3534_v51 = vld [vmem:[#allocation5_spill] sm:$0xff]  ;;  %v936_v48 = vsel %vm438_vm0, %v1791_v37, %v2691_v60 }
 0x1bd   : > { %v466_v7 = vsel %vm438_vm0, %v176_v18, %v3534_v51  ;;  %v1811_v51 = vld [vmem:[%s2281_s24 + $0x410] sm:$0xff] }
 0x1be   : > { %526 = vxpose.xlu1.b32.cont [8/16] %v462_v26, 128  ;;  %v177_v26 = vld [vmem:[%s2281_s24 + $0xe0] sm:$0xff] }
 0x1bf   : > { %980 = vxpose.xlu0.b32.cont [11/16] %v932_v40, 128  ;;  %v514_v10 = vpop.trf.xlu0  ;;  %v1792_v40 = vld [vmem:[%s2281_s24 + $0x378] sm:$0xff] }
 0x1c0   : > { %1762 = vst [vmem:[%s2913_s28 + $0x108] sm:$0xff] %v514_v10  ;;  %v467_v10 = vsel %vm438_vm0, %v177_v26, %v3535_v28  ;;  %v937_v39 = vsel %vm438_vm0, %v1792_v40, %v2698_v49  ;;  %v3540_v26 = vld [vmem:[#allocation18_spill] sm:$0xff]  ;;  %v1793_v40 = vld [vmem:[%s2281_s24 + $0x380] sm:$0xff] }
 0x1c2   : > { %527 = vxpose.xlu1.b32.cont [9/16] %v463_v50, 128  ;;  %v178_v50 = vld [vmem:[%s2281_s24 + $0xe8] sm:$0xff] }
 0x1c3   : > { %981 = vxpose.xlu0.b32.cont [12/16] %v933_v41, 128  ;;  %v515_v34 = vpop.trf.xlu0  ;;  %v3038_v41 = vpop.permute.xlu1 %1308 }
 0x1c4   : > { %1765 = vst [vmem:[%s2913_s28 + $0x120] sm:$0xff] %v515_v34  ;;  %v3536_v34 = vld [vmem:[#allocation7_spill] sm:$0xff] }
 0x1c5   : > { %v468_v54 = vsel %vm438_vm0, %v178_v50, %v3536_v34  ;;  %v1813_v34 = vld [vmem:[%s2281_s24 + $0x420] sm:$0xff] }
 0x1c6   : > { %528 = vxpose.xlu1.b32.cont [10/16] %v464_v29, 128  ;;  %v3537_v29 = vld [vmem:[#allocation17_spill] sm:$0xff] }
 0x1c7   : > { %982 = vxpose.xlu0.b32.cont [13/16] %v934_v44, 128  ;;  %v516_v53 = vpop.trf.xlu0  ;;  %v954_v44 = vsel %vm438_vm0, %v1809_v42, %v3537_v29  ;;  %v3049_v2 = vpop.permute.xlu1 %1312 }
 0x1c8   : > { %1768 = vst [vmem:[%s2913_s28 + $0x138] sm:$0xff] %v516_v53  ;;  %v1810_v53 = vld [vmem:[%s2281_s24 + $0x408] sm:$0xff] }
 0x1c9   : > { %v955_v18 = vsel %vm438_vm0, %v1810_v53, %v2782_v12  ;;  %v3542_v53 = vld [vmem:[#allocation10_spill] sm:$0xff] }
 0x1ca   : > { %529 = vxpose.xlu1.b32.cont [11/16] %v465_v59, 128  ;;  %v3538_v59 = vld [vmem:[#allocation8_spill] sm:$0xff] }
 0x1cb   : > { %983 = vxpose.xlu0.b32.cont [14/16] %v935_v45, 128  ;;  %v517_v27 = vpop.trf.xlu0  ;;  %v469_v45 = vsel %vm438_vm0, %v179_v36, %v3538_v59  ;;  %v3063_v28 = vpop.permute.xlu1 %1328  ;;  %v1795_v36 = vld [vmem:[%s2281_s24 + $0x390] sm:$0xff] }
 0x1cc   : > { %1771 = vst [vmem:[%s2913_s28 + $0x150] sm:$0xff] %v517_v27  ;;  %v180_v27 = vld [vmem:[%s2281_s24 + $0xf8] sm:$0xff]  ;;  %v940_v59 = vsel %vm438_vm0, %v1795_v36, %v3542_v53  ;;  %v1818_v36 = vld [vmem:[%s2281_s24 + $0x448] sm:$0xff] }
 0x1cd   : > { %v1800_v53 = vld [vmem:[%s2281_s24 + $0x3b8] sm:$0xff] }
 0x1ce   : > { %530 = vxpose.xlu1.b32.cont [12/16] %v466_v7, 128  ;;  %v3539_v7 = vld [vmem:[#allocation9_spill] sm:$0xff] }
 0x1cf   : > { %984 = vxpose.xlu0.b32.cont [15/16] %v936_v48, 128  ;;  %v518_v11 = vpop.trf.xlu0  ;;  %v470_v48 = vsel %vm438_vm0, %v180_v27, %v3539_v7  ;;  %v3543_v7 = vld [vmem:[#allocation20_spill] sm:$0xff] }
 0x1d0   : > { %1774 = vst [vmem:[%s2913_s28 + $0x168] sm:$0xff] %v518_v11  ;;  %v956_v11 = vsel %vm438_vm0, %v1811_v51, %v3540_v26  ;;  %v1797_v26 = vld [vmem:[%s2281_s24 + $0x3a0] sm:$0xff] }
 0x1d2   : > { %531 = vxpose.xlu1.b32.cont [13/16] %v467_v10, 128  ;;  %v1812_v10 = vld [vmem:[%s2281_s24 + $0x418] sm:$0xff] }
 0x1d3   : > { %985 = vxpose.xlu0.b32.end [16/16] %v937_v39, 128  ;;  %v567_v60 = vpop.trf.xlu0  ;;  %v938_v39 = vsel %vm438_vm0, %v1793_v40, %v2707_v52  ;;  %v957_v50 = vsel %vm438_vm0, %v1812_v10, %v2791_v20  ;;  %v3541_v52 = vld [vmem:[#allocation19_spill] sm:$0xff] }
 0x1d4   : > { %585 = vst [vmem:[%s2913_s28 + $0x10] sm:$0xff] %v567_v60  ;;  %v1794_v60 = vld [vmem:[%s2281_s24 + $0x388] sm:$0xff] }
 0x1d5   : > { %v939_v29 = vsel %vm438_vm0, %v1794_v60, %v2716_v1  ;;  %v1817_v60 = vld [vmem:[%s2281_s24 + $0x440] sm:$0xff] }
 0x1d6   : > { %532 = vxpose.xlu1.b32.cont [14/16] %v468_v54, 128  ;;  %v3074_v54 = vpop.permute.xlu1 %1332 }
 0x1d7   : > { %1034 = vxpose.xlu0.b32.start [1/16] %v954_v44, 128  ;;  %v568_v49 = vpop.trf.xlu0  ;;  %v958_v44 = vsel %vm438_vm0, %v1813_v34, %v3541_v52  ;;  %v3545_v34 = vld [vmem:[#allocation21_spill] sm:$0xff]  ;;  %v1799_v52 = vld [vmem:[%s2281_s24 + $0x3b0] sm:$0xff] }
 0x1d8   : > { %588 = vst [vmem:[%s2913_s28 + $0x28] sm:$0xff] %v568_v49  ;;  %v1814_v49 = vld [vmem:[%s2281_s24 + $0x428] sm:$0xff] }
 0x1d9   : > { %v959_v1 = vsel %vm438_vm0, %v1814_v49, %v2798_v16 }
 0x1da   : > { %533 = vxpose.xlu1.b32.cont [15/16] %v469_v45, 128  ;;  %v1796_v45 = vld [vmem:[%s2281_s24 + $0x398] sm:$0xff] }
 0x1db   : > { %1035 = vxpose.xlu0.b32.cont [2/16] %v955_v18, 128  ;;  %v569_v37 = vpop.trf.xlu0  ;;  %v3088_v18 = vpop.permute.xlu1 %1336  ;;  %v941_v51 = vsel %vm438_vm0, %v1796_v45, %v2723_v57 }
 0x1dc   : > { %591 = vst [vmem:[%s2913_s28 + $0x40] sm:$0xff] %v569_v37  ;;  %v1815_v37 = vld [vmem:[%s2281_s24 + $0x430] sm:$0xff] }
 0x1de   : > { %534 = vxpose.xlu1.b32.end [16/16] %v470_v48, 128  ;;  %v960_v48 = vsel %vm438_vm0, %v1815_v37, %v3543_v7  ;;  %v3547_v37 = vld [vmem:[#allocation22_spill] sm:$0xff]  ;;  %v1801_v7 = vld [vmem:[%s2281_s24 + $0x3c0] sm:$0xff] }
 0x1df   : > { %1036 = vxpose.xlu0.b32.cont [3/16] %v956_v11, 128  ;;  %v570_v12 = vpop.trf.xlu0  ;;  %v1816_v11 = vld [vmem:[%s2281_s24 + $0x438] sm:$0xff]  ;;  %v3099_v40 = vpop.permute.xlu1 %1340 }
 0x1e0   : > { %594 = vst [vmem:[%s2913_s28 + $0x58] sm:$0xff] %v570_v12  ;;  %v3544_v12 = vld [vmem:[#allocation11_spill] sm:$0xff]  ;;  %v961_v57 = vsel %vm438_vm0, %v1816_v11, %v2807_v17  ;;  %v1802_v11 = vld [vmem:[%s2281_s24 + $0x3c8] sm:$0xff] }
 0x1e1   : > { %v942_v10 = vsel %vm438_vm0, %v1797_v26, %v3544_v12  ;;  %v3548_v26 = vld [vmem:[#allocation13_spill] sm:$0xff] }
 0x1e2   : > { %1002 = vxpose.xlu1.b32.start [1/16] %v938_v39, 128  ;;  %v1798_v39 = vld [vmem:[%s2281_s24 + $0x3a8] sm:$0xff] }
 0x1e3   : > { %1037 = vxpose.xlu0.b32.cont [4/16] %v957_v50, 128  ;;  %v571_v42 = vpop.trf.xlu0 }
 0x1e4   : > { %597 = vst [vmem:[%s2913_s28 + $0x70] sm:$0xff] %v571_v42  ;;  %v943_v42 = vsel %vm438_vm0, %v1798_v39, %v2732_v58  ;;  %v963_v58 = vsel %vm438_vm0, %v1818_v36, %v2816_v25  ;;  %v947_v39 = vsel %vm438_vm0, %v1802_v11, %v2748_v4  ;;  %v1804_v36 = vld [vmem:[%s2281_s24 + $0x3d8] sm:$0xff] }
 0x1e6   : > { %1003 = vxpose.xlu1.b32.cont [2/16] %v939_v29, 128  ;;  %v962_v29 = vsel %vm438_vm0, %v1817_v60, %v3545_v34  ;;  %v1822_v34 = vld [vmem:[%s2281_s24 + $0x468] sm:$0xff] }
 0x1e7   : > { %1038 = vxpose.xlu0.b32.cont [5/16] %v958_v44, 128  ;;  %v572_v20 = vpop.trf.xlu0  ;;  %v3113_v44 = vpop.permute.xlu1 %1344  ;;  %v967_v4 = vsel %vm438_vm0, %v1822_v34, %v2832_v24 }
 0x1e8   : > { %600 = vst [vmem:[%s2913_s28 + $0x88] sm:$0xff] %v572_v20  ;;  %v3546_v20 = vld [vmem:[#allocation12_spill] sm:$0xff] }
 0x1e9   : > { %v944_v49 = vsel %vm438_vm0, %v1799_v52, %v3546_v20  ;;  %v3550_v52 = vld [vmem:[#allocation14_spill] sm:$0xff] }
 0x1ea   : > { %1004 = vxpose.xlu1.b32.cont [3/16] %v940_v59, 128 }
 0x1eb   : > { %1039 = vxpose.xlu0.b32.cont [6/16] %v959_v1, 128  ;;  %v573_v27 = vpop.trf.xlu0  ;;  %v1819_v1 = vld [vmem:[%s2281_s24 + $0x450] sm:$0xff]  ;;  %v3124_v45 = vpop.permute.xlu1 %1346 }
 0x1ec   : > { %603 = vst [vmem:[%s2913_s28 + $0xa0] sm:$0xff] %v573_v27  ;;  %v945_v27 = vsel %vm438_vm0, %v1800_v53, %v2741_v8  ;;  %v3551_v53 = vld [vmem:[#allocation24_spill] sm:$0xff] }
 0x1ee   : > { %1005 = vxpose.xlu1.b32.cont [4/16] %v941_v51, 128  ;;  %v964_v51 = vsel %vm438_vm0, %v1819_v1, %v3547_v37  ;;  %v1805_v1 = vld [vmem:[%s2281_s24 + $0x3e0] sm:$0xff]  ;;  %v1824_v37 = vld [vmem:[%s2281_s24 + $0x478] sm:$0xff] }
 0x1ef   : > { %1040 = vxpose.xlu0.b32.cont [7/16] %v960_v48, 128  ;;  %v574_v16 = vpop.trf.xlu0  ;;  %v1820_v48 = vld [vmem:[%s2281_s24 + $0x458] sm:$0xff]  ;;  %v3138_v12 = vpop.permute.xlu1 %1348 }
 0x1f0   : > { %606 = vst [vmem:[%s2913_s28 + $0xb8] sm:$0xff] %v574_v16  ;;  %v946_v16 = vsel %vm438_vm0, %v1801_v7, %v3548_v26  ;;  %v965_v8 = vsel %vm438_vm0, %v1820_v48, %v2823_v21  ;;  %v1921_v26 = vld [vmem:[%s2281_s24 + $0x600] sm:$0xff] }
 0x1f1   : > { %v1406_v11 = vsel %vm438_vm0, %v1921_v26, %v2848_v62 }
 0x1f2   : > { %1006 = vxpose.xlu1.b32.cont [5/16] %v942_v10, 128 }
 0x1f3   : > { %1041 = vxpose.xlu0.b32.cont [8/16] %v961_v57, 128  ;;  %v575_v50 = vpop.trf.xlu0  ;;  %v1821_v57 = vld [vmem:[%s2281_s24 + $0x460] sm:$0xff] }
 0x1f4   : > { %1755 = vst [vmem:[%s2913_s28 + $0xd0] sm:$0xff] %v575_v50  ;;  %v3549_v50 = vld [vmem:[#allocation23_spill] sm:$0xff] }
 0x1f5   : > { %v966_v60 = vsel %vm438_vm0, %v1821_v57, %v3549_v50  ;;  %v1922_v57 = vld [vmem:[%s2281_s24 + $0x608] sm:$0xff] }
 0x1f6   : > { %1007 = vxpose.xlu1.b32.cont [6/16] %v943_v42, 128  ;;  %v1803_v42 = vld [vmem:[%s2281_s24 + $0x3d0] sm:$0xff] }
 0x1f7   : > { %1042 = vxpose.xlu0.b32.cont [9/16] %v962_v29, 128  ;;  %v576_v17 = vpop.trf.xlu0  ;;  %v3149_v29 = vpop.permute.xlu1 %1350 }
 0x1f8   : > { %1758 = vst [vmem:[%s2913_s28 + $0xe8] sm:$0xff] %v576_v17  ;;  %v948_v17 = vsel %vm438_vm0, %v1803_v42, %v3550_v52 }
 0x1fa   : > { %1008 = vxpose.xlu1.b32.cont [7/16] %v944_v49, 128  ;;  %v1823_v49 = vld [vmem:[%s2281_s24 + $0x470] sm:$0xff] }
 0x1fb   : > { %1043 = vxpose.xlu0.b32.cont [10/16] %v963_v58, 128  ;;  %v577_v59 = vpop.trf.xlu0  ;;  %v949_v58 = vsel %vm438_vm0, %v1804_v36, %v2757_v5  ;;  %v969_v5 = vsel %vm438_vm0, %v1824_v37, %v2841_v6  ;;  %v1924_v36 = vld [vmem:[%s2281_s24 + $0x618] sm:$0xff]  ;;  %v1926_v37 = vld [vmem:[%s2281_s24 + $0x628] sm:$0xff] }
 0x1fc   : > { %1761 = vst [vmem:[%s2913_s28 + $0x100] sm:$0xff] %v577_v59  ;;  %v968_v59 = vsel %vm438_vm0, %v1823_v49, %v3551_v53  ;;  %v1925_v53 = vld [vmem:[%s2281_s24 + $0x620] sm:$0xff] }
 0x1fe   : > { %1009 = vxpose.xlu1.b32.cont [8/16] %v945_v27, 128  ;;  %v3163_v27 = vpop.permute.xlu1 %1352 }
 0x1ff   : > { %1044 = vxpose.xlu0.b32.cont [11/16] %v964_v51, 128  ;;  %v578_v25 = vpop.trf.xlu0  ;;  %v3552_v51 = vld [vmem:[#allocation15_spill] sm:$0xff] }
 0x200   : > { %1764 = vst [vmem:[%s2913_s28 + $0x118] sm:$0xff] %v578_v25  ;;  %v950_v7 = vsel %vm438_vm0, %v1805_v1, %v3552_v51  ;;  %v1806_v25 = vld [vmem:[%s2281_s24 + $0x3e8] sm:$0xff] }
 0x201   : > { %v3554_v51 = vld [vmem:[#allocation26_spill] sm:$0xff] }
 0x202   : > { %1010 = vxpose.xlu1.b32.cont [9/16] %v946_v16, 128  ;;  %v3174_v16 = vpop.permute.xlu1 %1354 }
 0x203   : > { %1045 = vxpose.xlu0.b32.cont [12/16] %v965_v8, 128  ;;  %v579_v10 = vpop.trf.xlu0  ;;  %v951_v8 = vsel %vm438_vm0, %v1806_v25, %v2766_v13  ;;  %v1407_v13 = vsel %vm438_vm0, %v1922_v57, %v2857_v63  ;;  %v3555_v57 = vld [vmem:[#allocation27_spill] sm:$0xff] }
 0x204   : > { %1767 = vst [vmem:[%s2913_s28 + $0x130] sm:$0xff] %v579_v10  ;;  %v1807_v10 = vld [vmem:[%s2281_s24 + $0x3f0] sm:$0xff] }
 0x206   : > { %1011 = vxpose.xlu1.b32.cont [10/16] %v947_v39, 128  ;;  %v3553_v39 = vld [vmem:[#allocation16_spill] sm:$0xff]  ;;  %v3188_v42 = vpop.permute.xlu1 %1356 }
 0x207   : > { %1046 = vxpose.xlu0.b32.cont [13/16] %v966_v60, 128  ;;  %v580_v21 = vpop.trf.xlu0  ;;  %v952_v50 = vsel %vm438_vm0, %v1807_v10, %v3553_v39  ;;  %v1808_v60 = vld [vmem:[%s2281_s24 + $0x3f8] sm:$0xff] }
 0x208   : > { %1770 = vst [vmem:[%s2913_s28 + $0x148] sm:$0xff] %v580_v21  ;;  %v1923_v21 = vld [vmem:[%s2281_s24 + $0x610] sm:$0xff]  ;;  %v953_v34 = vsel %vm438_vm0, %v1808_v60, %v2773_v9  ;;  %v1409_v9 = vsel %vm438_vm0, %v1924_v36, %v2872_v43  ;;  %v3557_v36 = vld [vmem:[#allocation28_spill] sm:$0xff] }
 0x209   : > { %v1408_v52 = vsel %vm438_vm0, %v1923_v21, %v2866_v15  ;;  %v1938_v15 = vld [vmem:[%s2281_s24 + $0x688] sm:$0xff]  ;;  %v1939_v43 = vld [vmem:[%s2281_s24 + $0x690] sm:$0xff] }
 0x20a   : > { %1012 = vxpose.xlu1.b32.cont [11/16] %v948_v17, 128  ;;  %v1937_v17 = vld [vmem:[%s2281_s24 + $0x680] sm:$0xff] }
 0x20b   : > { %1047 = vxpose.xlu0.b32.cont [14/16] %v967_v4, 128  ;;  %v581_v20 = vpop.trf.xlu0 }
 0x20c   : > { %1773 = vst [vmem:[%s2913_s28 + $0x160] sm:$0xff] %v581_v20  ;;  %v1422_v20 = vsel %vm438_vm0, %v1937_v17, %v2988_v32  ;;  %v1410_v32 = vsel %vm438_vm0, %v1925_v53, %v2879_v22  ;;  %v1940_v22 = vld [vmem:[%s2281_s24 + $0x698] sm:$0xff] }
 0x20d   : > { %v1425_v26 = vsel %vm438_vm0, %v1940_v22, %v3013_v55  ;;  %v3556_v55 = vld [vmem:[#allocation25_spill] sm:$0xff] }
 0x20e   : > { %1013 = vxpose.xlu1.b32.cont [12/16] %v949_v58, 128 }
 0x20f   : > { %1048 = vxpose.xlu0.b32.cont [15/16] %v968_v59, 128  ;;  %v582_v24 = vpop.trf.xlu0  ;;  %v1423_v59 = vsel %vm438_vm0, %v1938_v15, %v2999_v33  ;;  %v1411_v33 = vsel %vm438_vm0, %v1926_v37, %v2886_v23  ;;  %v1941_v23 = vld [vmem:[%s2281_s24 + $0x6a0] sm:$0xff] }
 0x210   : > { %1776 = vst [vmem:[%s2913_s28 + $0x178] sm:$0xff] %v582_v24  ;;  %v1426_v39 = vsel %vm438_vm0, %v1941_v23, %v3555_v57 }
 0x212   : > { %1014 = vxpose.xlu1.b32.cont [13/16] %v950_v7, 128  ;;  %v1424_v7 = vsel %vm438_vm0, %v1939_v43, %v3554_v51  ;;  %v1932_v43 = vld [vmem:[%s2281_s24 + $0x658] sm:$0xff] }
 0x213   : > { %1049 = vxpose.xlu0.b32.end [16/16] %v969_v5, 128  ;;  %v986_v48 = vpop.trf.xlu0 }
 0x214   : > { %1873 = vst [vmem:[%s2913_s28 + $0x180] sm:$0xff] %v986_v48  ;;  %v1927_v48 = vld [vmem:[%s2281_s24 + $0x630] sm:$0xff] }
 0x216   : > { %1015 = vxpose.xlu1.b32.cont [14/16] %v951_v8, 128  ;;  %v1412_v8 = vsel %vm438_vm0, %v1927_v48, %v2891_v0  ;;  %v1942_v0 = vld [vmem:[%s2281_s24 + $0x6a8] sm:$0xff] }
 0x217   : > { %1454 = vxpose.xlu0.b32.start [1/16] %v1406_v11, 128  ;;  %v987_v6 = vpop.trf.xlu0  ;;  %v1427_v21 = vsel %vm438_vm0, %v1942_v0, %v3024_v35  ;;  %v1934_v48 = vld [vmem:[%s2281_s24 + $0x668] sm:$0xff]  ;;  %v3560_v0 = vld [vmem:[#allocation36_spill] sm:$0xff] }
 0x218   : > { %1876 = vst [vmem:[%s2913_s28 + $0x198] sm:$0xff] %v987_v6  ;;  %v1928_v6 = vld [vmem:[%s2281_s24 + $0x638] sm:$0xff] }
 0x21a   : > { %1016 = vxpose.xlu1.b32.cont [15/16] %v952_v50, 128  ;;  %v1413_v50 = vsel %vm438_vm0, %v1928_v6, %v3556_v55 }
 0x21b   : > { %1455 = vxpose.xlu0.b32.cont [2/16] %v1407_v13, 128  ;;  %v988_v62 = vpop.trf.xlu0 }
 0x21c   : > { %1879 = vst [vmem:[%s2913_s28 + $0x1b0] sm:$0xff] %v988_v62  ;;  %v1929_v62 = vld [vmem:[%s2281_s24 + $0x640] sm:$0xff] }
 0x21e   : > { %1017 = vxpose.xlu1.b32.end [16/16] %v953_v34, 128  ;;  %v535_v63 = vpop.trf.xlu1  ;;  %v1414_v34 = vsel %vm438_vm0, %v1929_v62, %v2899_v31  ;;  %v1944_v31 = vld [vmem:[%s2281_s24 + $0x6b8] sm:$0xff] }
 0x21f   : > { %1456 = vxpose.xlu0.b32.cont [3/16] %v1408_v52, 128  ;;  %v989_v4 = vpop.trf.xlu0  ;;  %584 = vst [vmem:[%s2913_s28 + $0x8] sm:$0xff] %v535_v63  ;;  %v1943_v52 = vld [vmem:[%s2281_s24 + $0x6b0] sm:$0xff] }
 0x220   : > { %1882 = vst [vmem:[%s2913_s28 + $0x1c8] sm:$0xff] %v989_v4  ;;  %v1930_v4 = vld [vmem:[%s2281_s24 + $0x648] sm:$0xff] }
 0x221   : > { %v1415_v35 = vsel %vm438_vm0, %v1930_v4, %v2908_v56  ;;  %v1945_v56 = vld [vmem:[%s2281_s24 + $0x6c0] sm:$0xff] }
 0x222   : > { %1486 = vxpose.xlu1.b32.start [1/16] %v1422_v20, 128  ;;  %v536_v49 = vpop.trf.xlu1  ;;  %v1428_v20 = vsel %vm438_vm0, %v1943_v52, %v3557_v36 }
 0x223   : > { %1457 = vxpose.xlu0.b32.cont [4/16] %v1409_v9, 128  ;;  %v990_v58 = vpop.trf.xlu0  ;;  %587 = vst [vmem:[%s2913_s28 + $0x20] sm:$0xff] %v536_v49  ;;  %v1931_v49 = vld [vmem:[%s2281_s24 + $0x650] sm:$0xff] }
 0x224   : > { %1885 = vst [vmem:[%s2913_s28 + $0x1e0] sm:$0xff] %v990_v58  ;;  %v1429_v58 = vsel %vm438_vm0, %v1944_v31, %v3038_v41  ;;  %v1416_v53 = vsel %vm438_vm0, %v1931_v49, %v2918_v61  ;;  %v1417_v41 = vsel %vm438_vm0, %v1932_v43, %v2926_v38  ;;  %v1946_v61 = vld [vmem:[%s2281_s24 + $0x6c8] sm:$0xff]  ;;  %v1947_v38 = vld [vmem:[%s2281_s24 + $0x6d0] sm:$0xff]  ;;  %v1956_v43 = vld [vmem:[%s2281_s24 + $0x718] sm:$0xff] }
 0x226   : > { %1487 = vxpose.xlu1.b32.cont [2/16] %v1423_v59, 128  ;;  %v537_v1 = vpop.trf.xlu1 }
 0x227   : > { %1458 = vxpose.xlu0.b32.cont [5/16] %v1410_v32, 128  ;;  %v991_v24 = vpop.trf.xlu0  ;;  %590 = vst [vmem:[%s2913_s28 + $0x38] sm:$0xff] %v537_v1  ;;  %v3558_v1 = vld [vmem:[#allocation29_spill] sm:$0xff] }
 0x228   : > { %1888 = vst [vmem:[%s2913_s28 + $0x1f8] sm:$0xff] %v991_v24  ;;  %v1430_v24 = vsel %vm438_vm0, %v1945_v56, %v3558_v1  ;;  %v3564_v56 = vld [vmem:[#allocation31_spill] sm:$0xff]  ;;  %v1441_v1 = vsel %vm438_vm0, %v1956_v43, %v3074_v54 }
 0x22a   : > { %1488 = vxpose.xlu1.b32.cont [3/16] %v1424_v7, 128  ;;  %v538_v5 = vpop.trf.xlu1  ;;  %v1933_v7 = vld [vmem:[%s2281_s24 + $0x660] sm:$0xff] }
 0x22b   : > { %1459 = vxpose.xlu0.b32.cont [6/16] %v1411_v33, 128  ;;  %v992_v25 = vpop.trf.xlu0  ;;  %593 = vst [vmem:[%s2913_s28 + $0x50] sm:$0xff] %v538_v5  ;;  %v1431_v33 = vsel %vm438_vm0, %v1946_v61, %v3049_v2  ;;  %v1418_v22 = vsel %vm438_vm0, %v1933_v7, %v2938_v47  ;;  %v1419_v2 = vsel %vm438_vm0, %v1934_v48, %v2949_v46  ;;  %v1948_v47 = vld [vmem:[%s2281_s24 + $0x6d8] sm:$0xff]  ;;  %v1949_v46 = vld [vmem:[%s2281_s24 + $0x6e0] sm:$0xff] }
 0x22c   : > { %1891 = vst [vmem:[%s2913_s28 + $0x210] sm:$0xff] %v992_v25  ;;  %v1433_v6 = vsel %vm438_vm0, %v1948_v47, %v2863_v14  ;;  %v1957_v61 = vld [vmem:[%s2281_s24 + $0x720] sm:$0xff]  ;;  %v1960_v47 = vld [vmem:[%s2281_s24 + $0x738] sm:$0xff] }
 0x22d   : > { %v3566_v48 = vld [vmem:[#allocation33_spill] sm:$0xff] }
 0x22e   : > { %1489 = vxpose.xlu1.b32.cont [4/16] %v1425_v26, 128  ;;  %v539_v11 = vpop.trf.xlu1  ;;  %v3559_v26 = vld [vmem:[#allocation35_spill] sm:$0xff] }
 0x22f   : > { %1460 = vxpose.xlu0.b32.cont [7/16] %v1412_v8, 128  ;;  %v993_v10 = vpop.trf.xlu0  ;;  %596 = vst [vmem:[%s2913_s28 + $0x68] sm:$0xff] %v539_v11  ;;  %v1432_v8 = vsel %vm438_vm0, %v1947_v38, %v3559_v26 }
 0x230   : > { %1894 = vst [vmem:[%s2913_s28 + $0x228] sm:$0xff] %v993_v10  ;;  %v1935_v10 = vld [vmem:[%s2281_s24 + $0x670] sm:$0xff] }
 0x231   : > { %v1420_v57 = vsel %vm438_vm0, %v1935_v10, %v2963_v3  ;;  %v1950_v3 = vld [vmem:[%s2281_s24 + $0x6e8] sm:$0xff]  ;;  %v1961_v10 = vld [vmem:[%s2281_s24 + $0x740] sm:$0xff] }
 0x232   : > { %1490 = vxpose.xlu1.b32.cont [5/16] %v1426_v39, 128  ;;  %v540_v13 = vpop.trf.xlu1 }
 0x233   : > { %1461 = vxpose.xlu0.b32.cont [8/16] %v1413_v50, 128  ;;  %v994_v60 = vpop.trf.xlu0  ;;  %599 = vst [vmem:[%s2913_s28 + $0x80] sm:$0xff] %v540_v13  ;;  %v1936_v50 = vld [vmem:[%s2281_s24 + $0x678] sm:$0xff]  ;;  %v1434_v13 = vsel %vm438_vm0, %v1949_v46, %v3560_v0 }
 0x234   : > { %1897 = vst [vmem:[%s2913_s28 + $0x240] sm:$0xff] %v994_v60  ;;  %v1421_v14 = vsel %vm438_vm0, %v1936_v50, %v2974_v19  ;;  %v1951_v19 = vld [vmem:[%s2281_s24 + $0x6f0] sm:$0xff] }
 0x236   : > { %1491 = vxpose.xlu1.b32.cont [6/16] %v1427_v21, 128  ;;  %v541_v17 = vpop.trf.xlu1  ;;  %v1953_v21 = vld [vmem:[%s2281_s24 + $0x700] sm:$0xff] }
 0x237   : > { %1462 = vxpose.xlu0.b32.cont [9/16] %v1414_v34, 128  ;;  %v995_v63 = vpop.trf.xlu0  ;;  %602 = vst [vmem:[%s2913_s28 + $0x98] sm:$0xff] %v541_v17  ;;  %v3561_v34 = vld [vmem:[#allocation37_spill] sm:$0xff]  ;;  %v3562_v17 = vld [vmem:[#allocation30_spill] sm:$0xff] }
 0x238   : > { %1900 = vst [vmem:[%s2913_s28 + $0x258] sm:$0xff] %v995_v63  ;;  %v1435_v52 = vsel %vm438_vm0, %v1950_v3, %v3561_v34  ;;  %v1438_v63 = vsel %vm438_vm0, %v1953_v21, %v3562_v17 }
 0x23a   : > { %1492 = vxpose.xlu1.b32.cont [7/16] %v1428_v20, 128  ;;  %v542_v9 = vpop.trf.xlu1  ;;  %v1954_v20 = vld [vmem:[%s2281_s24 + $0x708] sm:$0xff] }
 0x23b   : > { %1463 = vxpose.xlu0.b32.cont [10/16] %v1415_v35, 128  ;;  %v996_v15 = vpop.trf.xlu0  ;;  %605 = vst [vmem:[%s2913_s28 + $0xb0] sm:$0xff] %v542_v9  ;;  %v1436_v35 = vsel %vm438_vm0, %v1951_v19, %v2893_v30  ;;  %v1439_v31 = vsel %vm438_vm0, %v1954_v20, %v3063_v28  ;;  %v1952_v9 = vld [vmem:[%s2281_s24 + $0x6f8] sm:$0xff]  ;;  %v1966_v19 = vld [vmem:[%s2281_s24 + $0x768] sm:$0xff]  ;;  %v1967_v20 = vld [vmem:[%s2281_s24 + $0x770] sm:$0xff] }
 0x23c   : > { %1903 = vst [vmem:[%s2913_s28 + $0x270] sm:$0xff] %v996_v15 }
 0x23e   : > { %1493 = vxpose.xlu1.b32.cont [8/16] %v1429_v58, 128  ;;  %v543_v59 = vpop.trf.xlu1  ;;  %v1955_v58 = vld [vmem:[%s2281_s24 + $0x710] sm:$0xff] }
 0x23f   : > { %1464 = vxpose.xlu0.b32.cont [11/16] %v1416_v53, 128  ;;  %v997_v32 = vpop.trf.xlu0  ;;  %1754 = vst [vmem:[%s2913_s28 + $0xc8] sm:$0xff] %v543_v59  ;;  %v3563_v53 = vld [vmem:[#allocation38_spill] sm:$0xff]  ;;  %v1440_v59 = vsel %vm438_vm0, %v1955_v58, %v3564_v56 }
 0x240   : > { %1906 = vst [vmem:[%s2913_s28 + $0x288] sm:$0xff] %v997_v32  ;;  %v1437_v30 = vsel %vm438_vm0, %v1952_v9, %v3563_v53  ;;  %v1968_v9 = vld [vmem:[%s2281_s24 + $0x778] sm:$0xff] }
 0x242   : > { %1494 = vxpose.xlu1.b32.cont [9/16] %v1430_v24, 128  ;;  %v544_v37 = vpop.trf.xlu1 }
 0x243   : > { %1465 = vxpose.xlu0.b32.cont [12/16] %v1417_v41, 128  ;;  %v998_v51 = vpop.trf.xlu0  ;;  %1757 = vst [vmem:[%s2913_s28 + $0xe0] sm:$0xff] %v544_v37  ;;  %v3565_v37 = vld [vmem:[#allocation32_spill] sm:$0xff] }
 0x244   : > { %1909 = vst [vmem:[%s2913_s28 + $0x2a0] sm:$0xff] %v998_v51  ;;  %v1442_v51 = vsel %vm438_vm0, %v1957_v61, %v3565_v37 }
 0x246   : > { %1495 = vxpose.xlu1.b32.cont [10/16] %v1431_v33, 128  ;;  %v545_v5 = vpop.trf.xlu1 }
 0x247   : > { %1466 = vxpose.xlu0.b32.cont [13/16] %v1418_v22, 128  ;;  %v999_v25 = vpop.trf.xlu0  ;;  %1760 = vst [vmem:[%s2913_s28 + $0xf8] sm:$0xff] %v545_v5  ;;  %v1958_v22 = vld [vmem:[%s2281_s24 + $0x728] sm:$0xff] }
 0x248   : > { %1912 = vst [vmem:[%s2913_s28 + $0x2b8] sm:$0xff] %v999_v25  ;;  %v1443_v54 = vsel %vm438_vm0, %v1958_v22, %v3088_v18  ;;  %v1959_v25 = vld [vmem:[%s2281_s24 + $0x730] sm:$0xff]  ;;  %v1445_v18 = vsel %vm438_vm0, %v1960_v47, %v3099_v40 }
 0x249   : > { %v1444_v26 = vsel %vm438_vm0, %v1959_v25, %v3566_v48 }
 0x24a   : > { %1496 = vxpose.xlu1.b32.cont [11/16] %v1432_v8, 128  ;;  %v546_v23 = vpop.trf.xlu1 }
 0x24b   : > { %1467 = vxpose.xlu0.b32.cont [14/16] %v1419_v2, 128  ;;  %v1000_v11 = vpop.trf.xlu0  ;;  %1763 = vst [vmem:[%s2913_s28 + $0x110] sm:$0xff] %v546_v23 }
 0x24c   : > { %1915 = vst [vmem:[%s2913_s28 + $0x2d0] sm:$0xff] %v1000_v11 }
 0x24e   : > { %1497 = vxpose.xlu1.b32.cont [12/16] %v1433_v6, 128  ;;  %v547_v39 = vpop.trf.xlu1  ;;  %v3567_v6 = vld [vmem:[#allocation34_spill] sm:$0xff] }
 0x24f   : > { %1468 = vxpose.xlu0.b32.cont [15/16] %v1420_v57, 128  ;;  %v1001_v55 = vpop.trf.xlu0  ;;  %1766 = vst [vmem:[%s2913_s28 + $0x128] sm:$0xff] %v547_v39  ;;  %v1446_v57 = vsel %vm438_vm0, %v1961_v10, %v3567_v6 }
 0x250   : > { %1918 = vst [vmem:[%s2913_s28 + $0x2e8] sm:$0xff] %v1001_v55  ;;  %v1962_v55 = vld [vmem:[%s2281_s24 + $0x748] sm:$0xff] }
 0x251   : > { %v1447_v40 = vsel %vm438_vm0, %v1962_v55, %v3113_v44 }
 0x252   : > { %1498 = vxpose.xlu1.b32.cont [13/16] %v1434_v13, 128  ;;  %v548_v60 = vpop.trf.xlu1  ;;  %v1963_v13 = vld [vmem:[%s2281_s24 + $0x750] sm:$0xff] }
 0x253   : > { %1469 = vxpose.xlu0.b32.end [16/16] %v1421_v14, 128  ;;  %v1050_v62 = vpop.trf.xlu0  ;;  %1769 = vst [vmem:[%s2913_s28 + $0x140] sm:$0xff] %v548_v60  ;;  %v1448_v14 = vsel %vm438_vm0, %v1963_v13, %v3124_v45 }
 0x254   : > { %1875 = vst [vmem:[%s2913_s28 + $0x190] sm:$0xff] %v1050_v62  ;;  %v1964_v62 = vld [vmem:[%s2281_s24 + $0x758] sm:$0xff] }
 0x255   : > { %v1449_v44 = vsel %vm438_vm0, %v1964_v62, %v3138_v12  ;;  %v1451_v12 = vsel %vm438_vm0, %v1966_v19, %v3163_v27  ;;  %v1453_v27 = vsel %vm438_vm0, %v1968_v9, %v3188_v42 }
 0x256   : > { %1499 = vxpose.xlu1.b32.cont [14/16] %v1435_v52, 128  ;;  %v549_v4 = vpop.trf.xlu1  ;;  %v1965_v52 = vld [vmem:[%s2281_s24 + $0x760] sm:$0xff] }
 0x257   : > { %1518 = vxpose.xlu0.b32.start [1/16] %v1438_v63, 128  ;;  %v1051_v36 = vpop.trf.xlu0  ;;  %1772 = vst [vmem:[%s2913_s28 + $0x158] sm:$0xff] %v549_v4  ;;  %v1450_v45 = vsel %vm438_vm0, %v1965_v52, %v3149_v29  ;;  %v1452_v29 = vsel %vm438_vm0, %v1967_v20, %v3174_v16 }
 0x258   : > { %1878 = vst [vmem:[%s2913_s28 + $0x1a8] sm:$0xff] %v1051_v36 }
 0x25a   : > { %1500 = vxpose.xlu1.b32.cont [15/16] %v1436_v35, 128  ;;  %v550_v15 = vpop.trf.xlu1 }
 0x25b   : > { %1519 = vxpose.xlu0.b32.cont [2/16] %v1439_v31, 128  ;;  %v1052_v49 = vpop.trf.xlu0  ;;  %1775 = vst [vmem:[%s2913_s28 + $0x170] sm:$0xff] %v550_v15 }
 0x25c   : > { %1881 = vst [vmem:[%s2913_s28 + $0x1c0] sm:$0xff] %v1052_v49 }
 0x25e   : > { %1501 = vxpose.xlu1.b32.end [16/16] %v1437_v30, 128  ;;  %v1018_v32 = vpop.trf.xlu1 }
 0x25f   : > { %1520 = vxpose.xlu0.b32.cont [3/16] %v1440_v59, 128  ;;  %v1053_v28 = vpop.trf.xlu0  ;;  %1874 = vst [vmem:[%s2913_s28 + $0x188] sm:$0xff] %v1018_v32 }
 0x260   : > { %1884 = vst [vmem:[%s2913_s28 + $0x1d8] sm:$0xff] %v1053_v28 }
 0x262   : > { %v1019_v24 = vpop.trf.xlu1 }
 0x263   : > { %1521 = vxpose.xlu0.b32.cont [4/16] %v1441_v1, 128  ;;  %v1054_v41 = vpop.trf.xlu0  ;;  %1877 = vst [vmem:[%s2913_s28 + $0x1a0] sm:$0xff] %v1019_v24 }
 0x264   : > { %1887 = vst [vmem:[%s2913_s28 + $0x1f0] sm:$0xff] %v1054_v41 }
 0x266   : > { %v1020_v7 = vpop.trf.xlu1 }
 0x267   : > { %1522 = vxpose.xlu0.b32.cont [5/16] %v1442_v51, 128  ;;  %v1055_v33 = vpop.trf.xlu0  ;;  %1880 = vst [vmem:[%s2913_s28 + $0x1b8] sm:$0xff] %v1020_v7 }
 0x268   : > { %1890 = vst [vmem:[%s2913_s28 + $0x208] sm:$0xff] %v1055_v33 }
 0x26a   : > { %v1021_v38 = vpop.trf.xlu1 }
 0x26b   : > { %1523 = vxpose.xlu0.b32.cont [6/16] %v1443_v54, 128  ;;  %v1056_v5 = vpop.trf.xlu0  ;;  %1883 = vst [vmem:[%s2913_s28 + $0x1d0] sm:$0xff] %v1021_v38 }
 0x26c   : > { %1893 = vst [vmem:[%s2913_s28 + $0x220] sm:$0xff] %v1056_v5 }
 0x26e   : > { %v1022_v8 = vpop.trf.xlu1 }
 0x26f   : > { %1524 = vxpose.xlu0.b32.cont [7/16] %v1444_v26, 128  ;;  %v1057_v2 = vpop.trf.xlu0  ;;  %1886 = vst [vmem:[%s2913_s28 + $0x1e8] sm:$0xff] %v1022_v8 }
 0x270   : > { %1896 = vst [vmem:[%s2913_s28 + $0x238] sm:$0xff] %v1057_v2 }
 0x272   : > { %v1023_v23 = vpop.trf.xlu1 }
 0x273   : > { %1525 = vxpose.xlu0.b32.cont [8/16] %v1445_v18, 128  ;;  %v1058_v11 = vpop.trf.xlu0  ;;  %1889 = vst [vmem:[%s2913_s28 + $0x200] sm:$0xff] %v1023_v23 }
 0x274   : > { %1899 = vst [vmem:[%s2913_s28 + $0x250] sm:$0xff] %v1058_v11 }
 0x276   : > { %v1024_v46 = vpop.trf.xlu1 }
 0x277   : > { %1526 = vxpose.xlu0.b32.cont [9/16] %v1446_v57, 128  ;;  %v1059_v39 = vpop.trf.xlu0  ;;  %1892 = vst [vmem:[%s2913_s28 + $0x218] sm:$0xff] %v1024_v46 }
 0x278   : > { %1902 = vst [vmem:[%s2913_s28 + $0x268] sm:$0xff] %v1059_v39 }
 0x27a   : > { %v1025_v50 = vpop.trf.xlu1 }
 0x27b   : > { %1527 = vxpose.xlu0.b32.cont [10/16] %v1447_v40, 128  ;;  %v1060_v0 = vpop.trf.xlu0  ;;  %1895 = vst [vmem:[%s2913_s28 + $0x230] sm:$0xff] %v1025_v50 }
 0x27c   : > { %1905 = vst [vmem:[%s2913_s28 + $0x280] sm:$0xff] %v1060_v0 }
 0x27e   : > { %v1026_v3 = vpop.trf.xlu1 }
 0x27f   : > { %1528 = vxpose.xlu0.b32.cont [11/16] %v1448_v14, 128  ;;  %v1061_v60 = vpop.trf.xlu0  ;;  %1898 = vst [vmem:[%s2913_s28 + $0x248] sm:$0xff] %v1026_v3 }
 0x280   : > { %1908 = vst [vmem:[%s2913_s28 + $0x298] sm:$0xff] %v1061_v60 }
 0x282   : > { %v1027_v21 = vpop.trf.xlu1 }
 0x283   : > { %1529 = vxpose.xlu0.b32.cont [12/16] %v1449_v44, 128  ;;  %v1062_v34 = vpop.trf.xlu0  ;;  %1901 = vst [vmem:[%s2913_s28 + $0x260] sm:$0xff] %v1027_v21 }
 0x284   : > { %1911 = vst [vmem:[%s2913_s28 + $0x2b0] sm:$0xff] %v1062_v34 }
 0x286   : > { %v1028_v17 = vpop.trf.xlu1 }
 0x287   : > { %1530 = vxpose.xlu0.b32.cont [13/16] %v1450_v45, 128  ;;  %v1063_v63 = vpop.trf.xlu0  ;;  %1904 = vst [vmem:[%s2913_s28 + $0x278] sm:$0xff] %v1028_v17 }
 0x288   : > { %1914 = vst [vmem:[%s2913_s28 + $0x2c8] sm:$0xff] %v1063_v63 }
 0x28a   : > { %v1029_v4 = vpop.trf.xlu1 }
 0x28b   : > { %1531 = vxpose.xlu0.b32.cont [14/16] %v1451_v12, 128  ;;  %v1064_v36 = vpop.trf.xlu0  ;;  %1907 = vst [vmem:[%s2913_s28 + $0x290] sm:$0xff] %v1029_v4 }
 0x28c   : > { %1917 = vst [vmem:[%s2913_s28 + $0x2e0] sm:$0xff] %v1064_v36 }
 0x28e   : > { %v1030_v35 = vpop.trf.xlu1 }
 0x28f   : > { %1532 = vxpose.xlu0.b32.cont [15/16] %v1452_v29, 128  ;;  %v1065_v31 = vpop.trf.xlu0  ;;  %1910 = vst [vmem:[%s2913_s28 + $0x2a8] sm:$0xff] %v1030_v35 }
 0x290   : > { %1920 = vst [vmem:[%s2913_s28 + $0x2f8] sm:$0xff] %v1065_v31 }
 0x292   : > { %v1031_v15 = vpop.trf.xlu1 }
 0x293   : > { %1533 = vxpose.xlu0.b32.end [16/16] %v1453_v27, 128  ;;  %v1470_v49 = vpop.trf.xlu0  ;;  %1913 = vst [vmem:[%s2913_s28 + $0x2c0] sm:$0xff] %v1031_v15 }
 0x294   : > { %2017 = vst [vmem:[%s2913_s28 + $0x300] sm:$0xff] %v1470_v49 }
 0x296   : > { %v1032_v16 = vpop.trf.xlu1 }
 0x297   : > { %v1471_v58 = vpop.trf.xlu0  ;;  %1916 = vst [vmem:[%s2913_s28 + $0x2d8] sm:$0xff] %v1032_v16 }
 0x298   : > { %2020 = vst [vmem:[%s2913_s28 + $0x318] sm:$0xff] %v1471_v58 }
 0x29a   : > { %v1033_v53 = vpop.trf.xlu1 }
 0x29b   : > { %v1472_v30 = vpop.trf.xlu0  ;;  %1919 = vst [vmem:[%s2913_s28 + $0x2f0] sm:$0xff] %v1033_v53 }
 0x29c   : > { %2023 = vst [vmem:[%s2913_s28 + $0x330] sm:$0xff] %v1472_v30 }
 0x29e   : > { %v1502_v42 = vpop.trf.xlu1 }
 0x29f   : > { %v1473_v56 = vpop.trf.xlu0  ;;  %2018 = vst [vmem:[%s2913_s28 + $0x308] sm:$0xff] %v1502_v42 }
 0x2a0   : > { %2026 = vst [vmem:[%s2913_s28 + $0x348] sm:$0xff] %v1473_v56 }
 0x2a2   : > { %v1503_v59 = vpop.trf.xlu1 }
 0x2a3   : > { %v1474_v32 = vpop.trf.xlu0  ;;  %2021 = vst [vmem:[%s2913_s28 + $0x320] sm:$0xff] %v1503_v59 }
 0x2a4   : > { %2029 = vst [vmem:[%s2913_s28 + $0x360] sm:$0xff] %v1474_v32 }
 0x2a6   : > { %v1504_v28 = vpop.trf.xlu1 }
 0x2a7   : > { %v1475_v43 = vpop.trf.xlu0  ;;  %2024 = vst [vmem:[%s2913_s28 + $0x338] sm:$0xff] %v1504_v28 }
 0x2a8   : > { %2032 = vst [vmem:[%s2913_s28 + $0x378] sm:$0xff] %v1475_v43 }
 0x2aa   : > { %v1505_v1 = vpop.trf.xlu1 }
 0x2ab   : > { %v1476_v24 = vpop.trf.xlu0  ;;  %2027 = vst [vmem:[%s2913_s28 + $0x350] sm:$0xff] %v1505_v1 }
 0x2ac   : > { %2035 = vst [vmem:[%s2913_s28 + $0x390] sm:$0xff] %v1476_v24 }
 0x2ae   : > { %v1506_v41 = vpop.trf.xlu1 }
 0x2af   : > { %v1477_v61 = vpop.trf.xlu0  ;;  %2030 = vst [vmem:[%s2913_s28 + $0x368] sm:$0xff] %v1506_v41 }
 0x2b0   : > { %2038 = vst [vmem:[%s2913_s28 + $0x3a8] sm:$0xff] %v1477_v61 }
 0x2b2   : > { %v1507_v37 = vpop.trf.xlu1 }
 0x2b3   : > { %v1478_v51 = vpop.trf.xlu0  ;;  %2033 = vst [vmem:[%s2913_s28 + $0x380] sm:$0xff] %v1507_v37 }
 0x2b4   : > { %2041 = vst [vmem:[%s2913_s28 + $0x3c0] sm:$0xff] %v1478_v51 }
 0x2b6   : > { %v1508_v7 = vpop.trf.xlu1 }
 0x2b7   : > { %v1479_v33 = vpop.trf.xlu0  ;;  %2036 = vst [vmem:[%s2913_s28 + $0x398] sm:$0xff] %v1508_v7 }
 0x2b8   : > { %2044 = vst [vmem:[%s2913_s28 + $0x3d8] sm:$0xff] %v1479_v33 }
 0x2ba   : > { %v1509_v22 = vpop.trf.xlu1 }
 0x2bb   : > { %v1480_v54 = vpop.trf.xlu0  ;;  %2039 = vst [vmem:[%s2913_s28 + $0x3b0] sm:$0xff] %v1509_v22 }
 0x2bc   : > { %2047 = vst [vmem:[%s2913_s28 + $0x3f0] sm:$0xff] %v1480_v54 }
 0x2be   : > { %v1510_v38 = vpop.trf.xlu1 }
 0x2bf   : > { %v1481_v5 = vpop.trf.xlu0  ;;  %2042 = vst [vmem:[%s2913_s28 + $0x3c8] sm:$0xff] %v1510_v38 }
 0x2c0   : > { %2050 = vst [vmem:[%s2913_s28 + $0x408] sm:$0xff] %v1481_v5 }
 0x2c2   : > { %v1511_v25 = vpop.trf.xlu1 }
 0x2c3   : > { %v1482_v48 = vpop.trf.xlu0  ;;  %2045 = vst [vmem:[%s2913_s28 + $0x3e0] sm:$0xff] %v1511_v25 }
 0x2c4   : > { %2053 = vst [vmem:[%s2913_s28 + $0x420] sm:$0xff] %v1482_v48 }
 0x2c6   : > { %v1512_v26 = vpop.trf.xlu1 }
 0x2c7   : > { %v1483_v8 = vpop.trf.xlu0  ;;  %2048 = vst [vmem:[%s2913_s28 + $0x3f8] sm:$0xff] %v1512_v26 }
 0x2c8   : > { %2056 = vst [vmem:[%s2913_s28 + $0x438] sm:$0xff] %v1483_v8 }
 0x2ca   : > { %v1513_v2 = vpop.trf.xlu1 }
 0x2cb   : > { %v1484_v47 = vpop.trf.xlu0  ;;  %2051 = vst [vmem:[%s2913_s28 + $0x410] sm:$0xff] %v1513_v2 }
 0x2cc   : > { %2059 = vst [vmem:[%s2913_s28 + $0x450] sm:$0xff] %v1484_v47 }
 0x2ce   : > { %v1514_v18 = vpop.trf.xlu1 }
 0x2cf   : > { %v1485_v23 = vpop.trf.xlu0  ;;  %2054 = vst [vmem:[%s2913_s28 + $0x428] sm:$0xff] %v1514_v18 }
 0x2d0   : > { %2062 = vst [vmem:[%s2913_s28 + $0x468] sm:$0xff] %v1485_v23 }
 0x2d2   : > { %v1515_v11 = vpop.trf.xlu1 }
 0x2d3   : > { %v1534_v10 = vpop.trf.xlu0  ;;  %2057 = vst [vmem:[%s2913_s28 + $0x440] sm:$0xff] %v1515_v11 }
 0x2d4   : > { %2019 = vst [vmem:[%s2913_s28 + $0x310] sm:$0xff] %v1534_v10 }
 0x2d6   : > { %v1516_v6 = vpop.trf.xlu1 }
 0x2d7   : > { %v1535_v57 = vpop.trf.xlu0  ;;  %2060 = vst [vmem:[%s2913_s28 + $0x458] sm:$0xff] %v1516_v6 }
 0x2d8   : > { %2022 = vst [vmem:[%s2913_s28 + $0x328] sm:$0xff] %v1535_v57 }
 0x2da   : > { %v1517_v46 = vpop.trf.xlu1 }
 0x2db   : > { %v1536_v39 = vpop.trf.xlu0  ;;  %2063 = vst [vmem:[%s2913_s28 + $0x470] sm:$0xff] %v1517_v46 }
 0x2dc   : > { %2025 = vst [vmem:[%s2913_s28 + $0x340] sm:$0xff] %v1536_v39 }
 0x2df   : > { %v1537_v55 = vpop.trf.xlu0 }
 0x2e0   : > { %2028 = vst [vmem:[%s2913_s28 + $0x358] sm:$0xff] %v1537_v55 }
 0x2e3   : > { %v1538_v40 = vpop.trf.xlu0 }
 0x2e4   : > { %2031 = vst [vmem:[%s2913_s28 + $0x370] sm:$0xff] %v1538_v40 }
 0x2e7   : > { %v1539_v50 = vpop.trf.xlu0 }
 0x2e8   : > { %2034 = vst [vmem:[%s2913_s28 + $0x388] sm:$0xff] %v1539_v50 }
 0x2eb   : > { %v1540_v0 = vpop.trf.xlu0 }
 0x2ec   : > { %2037 = vst [vmem:[%s2913_s28 + $0x3a0] sm:$0xff] %v1540_v0 }
 0x2ef   : > { %v1541_v13 = vpop.trf.xlu0 }
 0x2f0   : > { %2040 = vst [vmem:[%s2913_s28 + $0x3b8] sm:$0xff] %v1541_v13 }
 0x2f3   : > { %v1542_v14 = vpop.trf.xlu0 }
 0x2f4   : > { %2043 = vst [vmem:[%s2913_s28 + $0x3d0] sm:$0xff] %v1542_v14 }
 0x2f7   : > { %v1543_v3 = vpop.trf.xlu0 }
 0x2f8   : > { %2046 = vst [vmem:[%s2913_s28 + $0x3e8] sm:$0xff] %v1543_v3 }
 0x2fb   : > { %v1544_v60 = vpop.trf.xlu0 }
 0x2fc   : > { %2049 = vst [vmem:[%s2913_s28 + $0x400] sm:$0xff] %v1544_v60 }
 0x2ff   : > { %v1545_v62 = vpop.trf.xlu0 }
 0x300   : > { %2052 = vst [vmem:[%s2913_s28 + $0x418] sm:$0xff] %v1545_v62 }
 0x303   : > { %v1546_v44 = vpop.trf.xlu0 }
 0x304   : > { %2055 = vst [vmem:[%s2913_s28 + $0x430] sm:$0xff] %v1546_v44 }
 0x307   : > { %v1547_v21 = vpop.trf.xlu0 }
 0x308   : > { %2058 = vst [vmem:[%s2913_s28 + $0x448] sm:$0xff] %v1547_v21 }
 0x30b   : > { %v1548_v34 = vpop.trf.xlu0 }
 0x30c   : > { %2061 = vst [vmem:[%s2913_s28 + $0x460] sm:$0xff] %v1548_v34 }
 0x30f   : > { %v1549_v52 = vpop.trf.xlu0 }
 0x310   : > { %2064 = vst [vmem:[%s2913_s28 + $0x478] sm:$0xff] %v1549_v52 }
 0x311   : > { %2143 = shalt.err (!%p2140_p5)
}
 0x312   : > { %s2144_s17 = scalar_lea.hbm %s3444_s4, 18432  ;;  %s2148_s22 = scalar_lea.hbm %s3497_s1, 36864 }
 0x313   : > { %p2145_p6 = scmp.ne.s32.totalorder %s3444_s4, %s2144_s17  ;;  %p2149_p10 = scmp.lt.s32.totalorder %s3444_s4, %s3497_s1 }
 0x314   : > { %p2150_p11 = scmp.lt.s32.totalorder %s2148_s22, %s2144_s17 }
 0x315   : > { %p2146_p7 = pnand %p2145_p6, %p2262_p4 }
 0x316   : > { %p2151_p12 = por %p2150_p11, %p2149_p10 }
 0x317   : > { %p2147_p9 = pneg %p2146_p7 }
 0x319   : > { %p2152_p13 = pnand %p2151_p12, %p2147_p9 }
 0x31b   : > { %2155 = shalt.err (!%p2152_p13)
}
 0x31c   : > { %s2210_s25 = smov 384   ;;  %s2211_s26 = smov 24  }
 0x31d   : > { %2071 = dma.vmem_to_hbm [thread:$0]  (%p2262_p4), %s3446_s30, 18432, %s3444_s4, %s3451_s5, %s2210_s25, %s2210_s25, %s2211_s26  }
 0x31e PF: > { %p2078_p0 = scmp.ge.s32.totalorder %s2206_s11, 2  ;;  %s1632_s27 = sand.u32 1, %s2186_s6  }
 0x31f   : > { %s1633_s28 = scalar_lea.sflag [#allocation3], %s1632_s27 }
 0x320   : > { %p2074_p1 = pnand %p2078_p0, %p2269_p8 }
 0x322   : > { %p2075_p2 = pneg %p2074_p1 }
 0x324   : > { %2181 = dma.done.wait (%p2075_p2), %s1633_s28, 18432  }
 0x325   : > { %2183 = vsyncadd (%p2075_p2), %s1633_s28, 4294948864  ;;  %s14_s11 = sadd.s32 1, %s2206_s11   ;;  %s3568_s6 = smov %s2190_s7 }
 0x326   : > { %p11_p3 = scmp.ge.s32.totalorder %s14_s11, 4   ;;  %s3569_s7 = smov %s2194_s8 }
 0x327   : > { %s3570_s8 = smov %s2275_s19  ;;  %s3571_s9 = smov %s2202_s10 }
 0x328   : > { %s3572_s10 = smov %s3574_s14  ;;  %13 = sbr.rel (!%p11_p3) target bundleno = 4 (0x4), region = 69 }
 0x32d   :  { %1638 = vsyncpa [#allocation3], 1 }
 0x32e   :  { %1640 = vsyncpa [#allocation3 + $0x1], 1 }

</bundles_post_ra>
